<compile_context>
chip_gen: v7x
topology: tpu7x:2x2x1
jax: 0.10.0
libtpu: 0.0.40
codegen_flags: <defaults>
</compile_context>

<pallas_src>
import functools
import math

import jax
import jax.numpy as jnp
from jax.experimental import pallas as pl
from jax.experimental.pallas import tpu as pltpu


CFG = dict(
    image_size=16,
    patch_size=8,
    num_channels=3,
    hidden_size=32,
    num_layers=2,
    num_heads=4,
    intermediate_size=64,
    layer_norm_eps=1e-12,
)


# ----------------------------------------------------------------------------
# Fused Pallas kernel: whole ViT forward for a block of BB images
# ----------------------------------------------------------------------------

def _vit_forward_kernel(tok_ref, embed_add_ref, attn_bias_ref, patch_w_ref,
                        wqkv_ref, bqkv_ref, wo_pool_ref, w1_ref, b1_ref, w2_ref,
                        vec_h_ref, out_ref, *,
                        num_layers, num_heads, hidden, seq, images, eps):
    H = hidden
    nH = num_heads
    D = H // nH
    S = seq
    BB = images
    M = BB * S
    scale = 1.0 / math.sqrt(D)

    def row(i):
        # (1, H) broadcast row from the packed vector table (LN gamma/beta, biases).
        return vec_h_ref[i:i + 1, :]

    def layer_norm(x, g, b):
        mu = jnp.mean(x, axis=-1, keepdims=True)
        xc = x - mu
        var = jnp.mean(xc * xc, axis=-1, keepdims=True)
        return xc * jax.lax.rsqrt(var + eps) * g + b

    # --- patch embedding: one (M, CPP) @ (CPP, H) matmul for the whole block.
    # embed_add already folds conv bias + CLS token + position embeddings.
    x = jnp.dot(tok_ref[...], patch_w_ref[...], preferred_element_type=jnp.float32)
    x = x + embed_add_ref[...]                                        # (M, H)

    # Block-diagonal additive bias keeps attention per-image while score/context
    # matmuls run on the image-stacked matrices.
    attn_bias = attn_bias_ref[...]                                    # (M, M)

    for l in range(num_layers):
        base = 6 * l

        # ---- multi-head self-attention (LN1 fused, single fused QKV matmul) ----
        xn = layer_norm(x, row(base + 0), row(base + 1))
        qkv = jnp.dot(xn, wqkv_ref[l], preferred_element_type=jnp.float32) + bqkv_ref[l]
        ctx_heads = []
        for h in range(nH):
            qh = qkv[:, h * D:(h + 1) * D]                            # (M, D)
            kh = qkv[:, H + h * D:H + (h + 1) * D]
            vh = qkv[:, 2 * H + h * D:2 * H + (h + 1) * D]
            # contract last axes (q @ k^T) without materializing a transpose
            s = jax.lax.dot_general(qh, kh, (((1,), (1,)), ((), ())),
                                    preferred_element_type=jnp.float32)
            s = s * scale + attn_bias                                  # (M, M)
            m = jnp.max(s, axis=-1, keepdims=True)
            p = jnp.exp(s - m)
            p = p / jnp.sum(p, axis=-1, keepdims=True)                 # exact softmax
            ctx_heads.append(jnp.dot(p, vh, preferred_element_type=jnp.float32))
        ctx = jnp.concatenate(ctx_heads, axis=-1)                      # (M, H)
        x = x + jnp.dot(ctx, wo_pool_ref[l],
                        preferred_element_type=jnp.float32) + row(base + 2)

        # ---- MLP (LN2 fused) ----
        xn2 = layer_norm(x, row(base + 3), row(base + 4))
        mid = jnp.dot(xn2, w1_ref[l], preferred_element_type=jnp.float32) + b1_ref[l]
        # TODO(synk): HF ViT uses exact erf-GELU; tanh approximation used here for
        # guaranteed Mosaic lowering (numerically very close).
        mid = 0.5 * mid * (1.0 + jnp.tanh(
            0.7978845608028654 * (mid + 0.044715 * mid * mid * mid)))
        x = x + jnp.dot(mid, w2_ref[l], preferred_element_type=jnp.float32) + row(base + 5)

    # ---- final LayerNorm + pooler (dense + tanh), on the CLS rows only ----
    gbase = 6 * num_layers
    # gather rows {b*S} (one CLS row per image) with a tiny selection matmul
    sel = jnp.where(
        jax.lax.broadcasted_iota(jnp.int32, (BB, M), 1)
        == S * jax.lax.broadcasted_iota(jnp.int32, (BB, M), 0),
        1.0, 0.0)
    cls = jnp.dot(sel, x, preferred_element_type=jnp.float32)          # (BB, H)
    cls = layer_norm(cls, row(gbase + 0), row(gbase + 1))
    pooled = jnp.tanh(
        jnp.dot(cls, wo_pool_ref[num_layers], preferred_element_type=jnp.float32)
        + row(gbase + 2))
    out_ref[...] = pooled


# ----------------------------------------------------------------------------
# Wrapper: one pallas_call for the whole forward
# ----------------------------------------------------------------------------

def vit_pooler_forward(pixel_values, params, cfg):
    """Equivalent of ViTModel(pixel_values).pooler_output (frozen weights)."""
    B, C, Himg, Wimg = pixel_values.shape
    P = cfg["patch_size"]
    H = cfg["hidden_size"]
    L = cfg["num_layers"]
    gh, gw = Himg // P, Wimg // P
    n_patches = gh * gw
    S = n_patches + 1
    CPP = C * P * P

    # Images per grid step: whole batch in one step while the stacked row count
    # stays small (amortizes launch/DMA overhead, maximizes MXU rows); larger
    # batches use groups of 24 images so BB*S stays sublane-aligned (mult. of 8)
    # and multi-step grids can shard across v7x's two TensorCores.
    BB = B if B * S <= 256 else 24
    nsteps = -(-B // BB)
    Bp = nsteps * BB
    M = BB * S

    # NCHW -> (B, n_patches, C*P*P) patch flattening in (c, p, q) order (matches
    # Conv2d(C, H, kernel=P, stride=P).weight.reshape(H, -1).T). A zero "patch"
    # row is prepended per image for the CLS slot so the whole token matrix
    # comes out of one in-kernel matmul.
    xim = pixel_values.reshape(B, C, gh, P, gw, P).transpose(0, 2, 4, 1, 3, 5)
    patches = xim.reshape(B, n_patches, CPP)
    tokens = jnp.pad(patches, ((0, Bp - B), (1, 0), (0, 0))).reshape(Bp * S, CPP)

    # Host-side fold (frozen weights): row 0 = cls + pos[0]; rows i>=1 =
    # conv bias + pos[i]; tiled across the BB images of a step.
    embed_add = params["pos"] + jnp.concatenate(
        [params["cls"], jnp.tile(params["patch_b"], (n_patches, 1))], axis=0)
    embed_add = jnp.tile(embed_add, (BB, 1))                            # (M, H)

    # Block-diagonal additive attention bias: tokens only attend within their image.
    img_id = jnp.arange(M, dtype=jnp.int32) // S
    attn_bias = jnp.where(img_id[:, None] == img_id[None, :],
                          0.0, -1e30).astype(jnp.float32)               # (M, M)

    # Consolidated, layer-stacked weights: a few dense resident VMEM blocks
    # instead of ~33 tiny refs.
    wqkv = jnp.stack([lp["wqkv"] for lp in params["layers"]])           # (L, H, 3H)
    bqkv = jnp.stack([lp["bqkv"] for lp in params["layers"]])           # (L, 1, 3H)
    wo_pool = jnp.concatenate(
        [jnp.stack([lp["wo"] for lp in params["layers"]]),
         params["pool_w"][None]], axis=0)                               # (L+1, H, H)
    w1 = jnp.stack([lp["w1"] for lp in params["layers"]])               # (L, H, I)
    b1 = jnp.stack([lp["b1"] for lp in params["layers"]])               # (L, 1, I)
    w2 = jnp.stack([lp["w2"] for lp in params["layers"]])               # (L, I, H)
    vec_rows = []
    for lp in params["layers"]:
        vec_rows += [lp["ln1_g"], lp["ln1_b"], lp["bo"],
                     lp["ln2_g"], lp["ln2_b"], lp["b2"]]
    vec_rows += [params["ln_f_g"], params["ln_f_b"], params["pool_b"]]
    vec_h = jnp.concatenate(vec_rows, axis=0)                           # (6L+3, H)

    def resident(t):
        # Full-array block, same block index every grid step -> DMA'd once,
        # stays VMEM-resident across all batch blocks.
        ndim = t.ndim
        return pl.BlockSpec(t.shape, lambda g: (0,) * ndim)

    operands = [tokens, embed_add, attn_bias, params["patch_w"],
                wqkv, bqkv, wo_pool, w1, b1, w2, vec_h]
    in_specs = ([pl.BlockSpec((M, CPP), lambda g: (g, 0))]
                + [resident(t) for t in operands[1:]])

    kernel = functools.partial(
        _vit_forward_kernel,
        num_layers=L,
        num_heads=cfg["num_heads"],
        hidden=H,
        seq=S,
        images=BB,
        eps=cfg["layer_norm_eps"],
    )

    out = pl.pallas_call(
        kernel,
        grid=(nsteps,),
        out_shape=jax.ShapeDtypeStruct((Bp, H), jnp.float32),
        in_specs=in_specs,
        out_specs=pl.BlockSpec((BB, H), lambda g: (g, 0)),
        compiler_params=pltpu.CompilerParams(
            dimension_semantics=("parallel",)),   # multi-step grids feed both v7x TCs
    )(*operands)
    return out[:B]


# ----------------------------------------------------------------------------
# Frozen synthetic parameters (pretrained ViT weights are not loadable here)
# ----------------------------------------------------------------------------

def init_params(key, cfg):
    H = cfg["hidden_size"]
    I = cfg["intermediate_size"]
    C = cfg["num_channels"]
    P = cfg["patch_size"]
    n_patches = (cfg["image_size"] // P) ** 2
    S = n_patches + 1

    def nrm(k, shape, scale=0.02):
        return scale * jax.random.normal(k, shape, dtype=jnp.float32)

    keys = iter(jax.random.split(key, 8 + 8 * cfg["num_layers"]))
    params = dict(
        # flattened Conv2d(C, H, kernel=P, stride=P) weight in (c, p, q) order
        patch_w=nrm(next(keys), (C * P * P, H)),
        patch_b=nrm(next(keys), (1, H)),
        cls=nrm(next(keys), (1, H)),
        pos=nrm(next(keys), (S, H)),
        ln_f_g=jnp.ones((1, H), jnp.float32),
        ln_f_b=jnp.zeros((1, H), jnp.float32),
        pool_w=nrm(next(keys), (H, H)),
        pool_b=nrm(next(keys), (1, H)),
        layers=[],
    )
    for _ in range(cfg["num_layers"]):
        lp = dict(
            ln1_g=jnp.ones((1, H), jnp.float32), ln1_b=jnp.zeros((1, H), jnp.float32),
            # packed QKV projection: columns [0:H]=Q, [H:2H]=K, [2H:3H]=V, heads as
            # contiguous D-wide chunks inside each block (== standard (H,H) Q/K/V
            # projection matrices concatenated along the output axis).
            wqkv=nrm(next(keys), (H, 3 * H)),
            bqkv=nrm(next(keys), (1, 3 * H)),
            wo=nrm(next(keys), (H, H)),     # attention output projection
            bo=nrm(next(keys), (1, H)),
            ln2_g=jnp.ones((1, H), jnp.float32), ln2_b=jnp.zeros((1, H), jnp.float32),
            w1=nrm(next(keys), (H, I)), b1=nrm(next(keys), (1, I)),
            w2=nrm(next(keys), (I, H)), b2=nrm(next(keys), (1, H)),
        )
        params["layers"].append(lp)
    return params


if __name__ == "__main__":
    key = jax.random.PRNGKey(0)
    k_param, k_input = jax.random.split(key)

    params = init_params(k_param, CFG)
    pixel_values = jax.random.normal(
        k_input,
        (2, CFG["num_channels"], CFG["image_size"], CFG["image_size"]),
        dtype=jnp.float32,
    )

    fwd = jax.jit(lambda px: vit_pooler_forward(px, params, CFG))
    out = jax.block_until_ready(fwd(pixel_values))

    assert out.shape == (2, CFG["hidden_size"]), out.shape
    assert bool(jnp.all(jnp.isfinite(out)))
    assert bool(jnp.all(jnp.abs(out) <= 1.0))  # tanh output range
    print("KERNEL_OK")
</pallas_src>

<mosaic_0001>
module attributes {stable_mosaic.version = 11 : i64} {
  func.func @_vit_forward_kernel(%arg0: i32, %arg1: memref<10x192xf32, #tpu.memory_space<vmem>>, %arg2: memref<10x32xf32, #tpu.memory_space<vmem>>, %arg3: memref<10x10xf32, #tpu.memory_space<vmem>>, %arg4: memref<192x32xf32, #tpu.memory_space<vmem>>, %arg5: memref<2x32x96xf32, #tpu.memory_space<vmem>>, %arg6: memref<2x1x96xf32, #tpu.memory_space<vmem>>, %arg7: memref<3x32x32xf32, #tpu.memory_space<vmem>>, %arg8: memref<2x32x64xf32, #tpu.memory_space<vmem>>, %arg9: memref<2x1x64xf32, #tpu.memory_space<vmem>>, %arg10: memref<2x64x32xf32, #tpu.memory_space<vmem>>, %arg11: memref<15x32xf32, #tpu.memory_space<vmem>>, %arg12: memref<2x32xf32, #tpu.memory_space<vmem>>) attributes {dimension_semantics = [#tpu.dimension_semantics<parallel>], iteration_bounds = array<i64: 1>, scalar_prefetch = 0 : i64, scratch_operands = 0 : i64, tpu.core_type = #tpu.core_type<tc>, window_params = [{transform_indices = @transform_0, window_bounds = array<i64: 10, 192>}, {pipeline_mode = #tpu.pipeline_mode<synchronous>, transform_indices = @transform_1, window_bounds = array<i64: 10, 32>}, {pipeline_mode = #tpu.pipeline_mode<synchronous>, transform_indices = @transform_2, window_bounds = array<i64: 10, 10>}, {pipeline_mode = #tpu.pipeline_mode<synchronous>, transform_indices = @transform_3, window_bounds = array<i64: 192, 32>}, {pipeline_mode = #tpu.pipeline_mode<synchronous>, transform_indices = @transform_4, window_bounds = array<i64: 2, 32, 96>}, {pipeline_mode = #tpu.pipeline_mode<synchronous>, transform_indices = @transform_5, window_bounds = array<i64: 2, 1, 96>}, {pipeline_mode = #tpu.pipeline_mode<synchronous>, transform_indices = @transform_6, window_bounds = array<i64: 3, 32, 32>}, {pipeline_mode = #tpu.pipeline_mode<synchronous>, transform_indices = @transform_7, window_bounds = array<i64: 2, 32, 64>}, {pipeline_mode = #tpu.pipeline_mode<synchronous>, transform_indices = @transform_8, window_bounds = array<i64: 2, 1, 64>}, {pipeline_mode = #tpu.pipeline_mode<synchronous>, transform_indices = @transform_9, window_bounds = array<i64: 2, 64, 32>}, {pipeline_mode = #tpu.pipeline_mode<synchronous>, transform_indices = @transform_10, window_bounds = array<i64: 15, 32>}, {transform_indices = @transform_11, window_bounds = array<i64: 2, 32>}]} {
    %c0 = arith.constant 0 : index
    %c0_0 = arith.constant 0 : index
    %0 = vector.load %arg1[%c0, %c0_0] : memref<10x192xf32, #tpu.memory_space<vmem>>, vector<10x192xf32>
    %c0_1 = arith.constant 0 : index
    %c0_2 = arith.constant 0 : index
    %1 = vector.load %arg4[%c0_1, %c0_2] : memref<192x32xf32, #tpu.memory_space<vmem>>, vector<192x32xf32>
    %cst = arith.constant dense<0.000000e+00> : vector<10x32xf32>
    %2 = tpu.matmul %0, %1, %cst {dimension_numbers = #tpu.dot_dimension_numbers<[1], [0], [0], [1], [0, 0, 1, 1], [], []>} : vector<10x192xf32>, vector<192x32xf32>, vector<10x32xf32> -> vector<10x32xf32>
    %c0_3 = arith.constant 0 : index
    %c0_4 = arith.constant 0 : index
    %3 = vector.load %arg2[%c0_3, %c0_4] : memref<10x32xf32, #tpu.memory_space<vmem>>, vector<10x32xf32>
    %4 = arith.addf %2, %3 : vector<10x32xf32>
    %c0_5 = arith.constant 0 : index
    %c0_6 = arith.constant 0 : index
    %5 = vector.load %arg3[%c0_5, %c0_6] : memref<10x10xf32, #tpu.memory_space<vmem>>, vector<10x10xf32>
    %c0_7 = arith.constant 0 : index
    %c0_8 = arith.constant 0 : index
    %6 = vector.load %arg11[%c0_7, %c0_8] : memref<15x32xf32, #tpu.memory_space<vmem>>, vector<1x32xf32>
    %c1 = arith.constant 1 : index
    %c0_9 = arith.constant 0 : index
    %7 = vector.load %arg11[%c1, %c0_9] : memref<15x32xf32, #tpu.memory_space<vmem>>, vector<1x32xf32>
    %cst_10 = arith.constant dense<0.000000e+00> : vector<10xf32>
    %8 = vector.multi_reduction <add>, %4, %cst_10 [1] : vector<10x32xf32> to vector<10xf32>
    %9 = vector.shape_cast %8 : vector<10xf32> to vector<10x1xf32>
    %cst_11 = arith.constant 3.200000e+01 : f32
    %10 = vector.broadcast %cst_11 : f32 to vector<10x1xf32>
    %11 = arith.divf %9, %10 : vector<10x1xf32>
    %12 = vector.broadcast %11 : vector<10x1xf32> to vector<10x32xf32>
    %13 = arith.subf %4, %12 : vector<10x32xf32>
    %14 = arith.mulf %13, %13 : vector<10x32xf32>
    %cst_12 = arith.constant dense<0.000000e+00> : vector<10xf32>
    %15 = vector.multi_reduction <add>, %14, %cst_12 [1] : vector<10x32xf32> to vector<10xf32>
    %16 = vector.shape_cast %15 : vector<10xf32> to vector<10x1xf32>
    %cst_13 = arith.constant 3.200000e+01 : f32
    %17 = vector.broadcast %cst_13 : f32 to vector<10x1xf32>
    %18 = arith.divf %16, %17 : vector<10x1xf32>
    %cst_14 = arith.constant 9.99999996E-13 : f32
    %19 = vector.broadcast %cst_14 : f32 to vector<10x1xf32>
    %20 = arith.addf %18, %19 : vector<10x1xf32>
    %21 = math.rsqrt %20 : vector<10x1xf32>
    %22 = vector.broadcast %21 : vector<10x1xf32> to vector<10x32xf32>
    %23 = arith.mulf %13, %22 : vector<10x32xf32>
    %24 = vector.broadcast %6 : vector<1x32xf32> to vector<10x32xf32>
    %25 = arith.mulf %23, %24 : vector<10x32xf32>
    %26 = vector.broadcast %7 : vector<1x32xf32> to vector<10x32xf32>
    %27 = arith.addf %25, %26 : vector<10x32xf32>
    %c0_15 = arith.constant 0 : index
    %c0_16 = arith.constant 0 : index
    %c0_17 = arith.constant 0 : index
    %28 = vector.load %arg5[%c0_15, %c0_16, %c0_17] : memref<2x32x96xf32, #tpu.memory_space<vmem>>, vector<1x32x96xf32>
    %29 = vector.shape_cast %28 : vector<1x32x96xf32> to vector<32x96xf32>
    %cst_18 = arith.constant dense<0.000000e+00> : vector<10x96xf32>
    %30 = tpu.matmul %27, %29, %cst_18 {dimension_numbers = #tpu.dot_dimension_numbers<[1], [0], [0], [1], [0, 0, 1, 1], [], []>} : vector<10x32xf32>, vector<32x96xf32>, vector<10x96xf32> -> vector<10x96xf32>
    %c0_19 = arith.constant 0 : index
    %c0_20 = arith.constant 0 : index
    %c0_21 = arith.constant 0 : index
    %31 = vector.load %arg6[%c0_19, %c0_20, %c0_21] : memref<2x1x96xf32, #tpu.memory_space<vmem>>, vector<1x1x96xf32>
    %32 = vector.shape_cast %31 : vector<1x1x96xf32> to vector<1x96xf32>
    %33 = vector.broadcast %32 : vector<1x96xf32> to vector<10x96xf32>
    %34 = arith.addf %30, %33 : vector<10x96xf32>
    %35 = vector.extract_strided_slice %34 {offsets = [0, 0], sizes = [10, 8], strides = [1, 1]} : vector<10x96xf32> to vector<10x8xf32>
    %36 = vector.extract_strided_slice %34 {offsets = [0, 32], sizes = [10, 8], strides = [1, 1]} : vector<10x96xf32> to vector<10x8xf32>
    %37 = vector.extract_strided_slice %34 {offsets = [0, 64], sizes = [10, 8], strides = [1, 1]} : vector<10x96xf32> to vector<10x8xf32>
    %cst_22 = arith.constant dense<0.000000e+00> : vector<10x10xf32>
    %38 = tpu.matmul %35, %36, %cst_22 {dimension_numbers = #tpu.dot_dimension_numbers<[1], [1], [0], [0], [0, 0, 1, 0], [], []>} : vector<10x8xf32>, vector<10x8xf32>, vector<10x10xf32> -> vector<10x10xf32>
    %cst_23 = arith.constant 0.353553385 : f32
    %39 = vector.broadcast %cst_23 : f32 to vector<10x10xf32>
    %40 = arith.mulf %38, %39 : vector<10x10xf32>
    %41 = arith.addf %40, %5 : vector<10x10xf32>
    %cst_24 = arith.constant dense<0xFF800000> : vector<10xf32>
    %42 = vector.multi_reduction <maximumf>, %41, %cst_24 [1] : vector<10x10xf32> to vector<10xf32>
    %43 = vector.shape_cast %42 : vector<10xf32> to vector<10x1xf32>
    %44 = vector.broadcast %43 : vector<10x1xf32> to vector<10x10xf32>
    %45 = arith.subf %41, %44 : vector<10x10xf32>
    %46 = math.exp %45 : vector<10x10xf32>
    %cst_25 = arith.constant dense<0.000000e+00> : vector<10xf32>
    %47 = vector.multi_reduction <add>, %46, %cst_25 [1] : vector<10x10xf32> to vector<10xf32>
    %48 = vector.shape_cast %47 : vector<10xf32> to vector<10x1xf32>
    %49 = vector.broadcast %48 : vector<10x1xf32> to vector<10x10xf32>
    %50 = arith.divf %46, %49 : vector<10x10xf32>
    %cst_26 = arith.constant dense<0.000000e+00> : vector<10x8xf32>
    %51 = tpu.matmul %50, %37, %cst_26 {dimension_numbers = #tpu.dot_dimension_numbers<[1], [0], [0], [1], [0, 0, 1, 1], [], []>} : vector<10x10xf32>, vector<10x8xf32>, vector<10x8xf32> -> vector<10x8xf32>
    %52 = vector.extract_strided_slice %34 {offsets = [0, 8], sizes = [10, 8], strides = [1, 1]} : vector<10x96xf32> to vector<10x8xf32>
    %53 = vector.extract_strided_slice %34 {offsets = [0, 40], sizes = [10, 8], strides = [1, 1]} : vector<10x96xf32> to vector<10x8xf32>
    %54 = vector.extract_strided_slice %34 {offsets = [0, 72], sizes = [10, 8], strides = [1, 1]} : vector<10x96xf32> to vector<10x8xf32>
    %cst_27 = arith.constant dense<0.000000e+00> : vector<10x10xf32>
    %55 = tpu.matmul %52, %53, %cst_27 {dimension_numbers = #tpu.dot_dimension_numbers<[1], [1], [0], [0], [0, 0, 1, 0], [], []>} : vector<10x8xf32>, vector<10x8xf32>, vector<10x10xf32> -> vector<10x10xf32>
    %cst_28 = arith.constant 0.353553385 : f32
    %56 = vector.broadcast %cst_28 : f32 to vector<10x10xf32>
    %57 = arith.mulf %55, %56 : vector<10x10xf32>
    %58 = arith.addf %57, %5 : vector<10x10xf32>
    %cst_29 = arith.constant dense<0xFF800000> : vector<10xf32>
    %59 = vector.multi_reduction <maximumf>, %58, %cst_29 [1] : vector<10x10xf32> to vector<10xf32>
    %60 = vector.shape_cast %59 : vector<10xf32> to vector<10x1xf32>
    %61 = vector.broadcast %60 : vector<10x1xf32> to vector<10x10xf32>
    %62 = arith.subf %58, %61 : vector<10x10xf32>
    %63 = math.exp %62 : vector<10x10xf32>
    %cst_30 = arith.constant dense<0.000000e+00> : vector<10xf32>
    %64 = vector.multi_reduction <add>, %63, %cst_30 [1] : vector<10x10xf32> to vector<10xf32>
    %65 = vector.shape_cast %64 : vector<10xf32> to vector<10x1xf32>
    %66 = vector.broadcast %65 : vector<10x1xf32> to vector<10x10xf32>
    %67 = arith.divf %63, %66 : vector<10x10xf32>
    %cst_31 = arith.constant dense<0.000000e+00> : vector<10x8xf32>
    %68 = tpu.matmul %67, %54, %cst_31 {dimension_numbers = #tpu.dot_dimension_numbers<[1], [0], [0], [1], [0, 0, 1, 1], [], []>} : vector<10x10xf32>, vector<10x8xf32>, vector<10x8xf32> -> vector<10x8xf32>
    %69 = vector.extract_strided_slice %34 {offsets = [0, 16], sizes = [10, 8], strides = [1, 1]} : vector<10x96xf32> to vector<10x8xf32>
    %70 = vector.extract_strided_slice %34 {offsets = [0, 48], sizes = [10, 8], strides = [1, 1]} : vector<10x96xf32> to vector<10x8xf32>
    %71 = vector.extract_strided_slice %34 {offsets = [0, 80], sizes = [10, 8], strides = [1, 1]} : vector<10x96xf32> to vector<10x8xf32>
    %cst_32 = arith.constant dense<0.000000e+00> : vector<10x10xf32>
    %72 = tpu.matmul %69, %70, %cst_32 {dimension_numbers = #tpu.dot_dimension_numbers<[1], [1], [0], [0], [0, 0, 1, 0], [], []>} : vector<10x8xf32>, vector<10x8xf32>, vector<10x10xf32> -> vector<10x10xf32>
    %cst_33 = arith.constant 0.353553385 : f32
    %73 = vector.broadcast %cst_33 : f32 to vector<10x10xf32>
    %74 = arith.mulf %72, %73 : vector<10x10xf32>
    %75 = arith.addf %74, %5 : vector<10x10xf32>
    %cst_34 = arith.constant dense<0xFF800000> : vector<10xf32>
    %76 = vector.multi_reduction <maximumf>, %75, %cst_34 [1] : vector<10x10xf32> to vector<10xf32>
    %77 = vector.shape_cast %76 : vector<10xf32> to vector<10x1xf32>
    %78 = vector.broadcast %77 : vector<10x1xf32> to vector<10x10xf32>
    %79 = arith.subf %75, %78 : vector<10x10xf32>
    %80 = math.exp %79 : vector<10x10xf32>
    %cst_35 = arith.constant dense<0.000000e+00> : vector<10xf32>
    %81 = vector.multi_reduction <add>, %80, %cst_35 [1] : vector<10x10xf32> to vector<10xf32>
    %82 = vector.shape_cast %81 : vector<10xf32> to vector<10x1xf32>
    %83 = vector.broadcast %82 : vector<10x1xf32> to vector<10x10xf32>
    %84 = arith.divf %80, %83 : vector<10x10xf32>
    %cst_36 = arith.constant dense<0.000000e+00> : vector<10x8xf32>
    %85 = tpu.matmul %84, %71, %cst_36 {dimension_numbers = #tpu.dot_dimension_numbers<[1], [0], [0], [1], [0, 0, 1, 1], [], []>} : vector<10x10xf32>, vector<10x8xf32>, vector<10x8xf32> -> vector<10x8xf32>
    %86 = vector.extract_strided_slice %34 {offsets = [0, 24], sizes = [10, 8], strides = [1, 1]} : vector<10x96xf32> to vector<10x8xf32>
    %87 = vector.extract_strided_slice %34 {offsets = [0, 56], sizes = [10, 8], strides = [1, 1]} : vector<10x96xf32> to vector<10x8xf32>
    %88 = vector.extract_strided_slice %34 {offsets = [0, 88], sizes = [10, 8], strides = [1, 1]} : vector<10x96xf32> to vector<10x8xf32>
    %cst_37 = arith.constant dense<0.000000e+00> : vector<10x10xf32>
    %89 = tpu.matmul %86, %87, %cst_37 {dimension_numbers = #tpu.dot_dimension_numbers<[1], [1], [0], [0], [0, 0, 1, 0], [], []>} : vector<10x8xf32>, vector<10x8xf32>, vector<10x10xf32> -> vector<10x10xf32>
    %cst_38 = arith.constant 0.353553385 : f32
    %90 = vector.broadcast %cst_38 : f32 to vector<10x10xf32>
    %91 = arith.mulf %89, %90 : vector<10x10xf32>
    %92 = arith.addf %91, %5 : vector<10x10xf32>
    %cst_39 = arith.constant dense<0xFF800000> : vector<10xf32>
    %93 = vector.multi_reduction <maximumf>, %92, %cst_39 [1] : vector<10x10xf32> to vector<10xf32>
    %94 = vector.shape_cast %93 : vector<10xf32> to vector<10x1xf32>
    %95 = vector.broadcast %94 : vector<10x1xf32> to vector<10x10xf32>
    %96 = arith.subf %92, %95 : vector<10x10xf32>
    %97 = math.exp %96 : vector<10x10xf32>
    %cst_40 = arith.constant dense<0.000000e+00> : vector<10xf32>
    %98 = vector.multi_reduction <add>, %97, %cst_40 [1] : vector<10x10xf32> to vector<10xf32>
    %99 = vector.shape_cast %98 : vector<10xf32> to vector<10x1xf32>
    %100 = vector.broadcast %99 : vector<10x1xf32> to vector<10x10xf32>
    %101 = arith.divf %97, %100 : vector<10x10xf32>
    %cst_41 = arith.constant dense<0.000000e+00> : vector<10x8xf32>
    %102 = tpu.matmul %101, %88, %cst_41 {dimension_numbers = #tpu.dot_dimension_numbers<[1], [0], [0], [1], [0, 0, 1, 1], [], []>} : vector<10x10xf32>, vector<10x8xf32>, vector<10x8xf32> -> vector<10x8xf32>
    %103 = tpu.concatenate %51, %68, %85, %102 in 1 : vector<10x8xf32>, vector<10x8xf32>, vector<10x8xf32>, vector<10x8xf32> -> vector<10x32xf32>
    %c0_42 = arith.constant 0 : index
    %c0_43 = arith.constant 0 : index
    %c0_44 = arith.constant 0 : index
    %104 = vector.load %arg7[%c0_42, %c0_43, %c0_44] : memref<3x32x32xf32, #tpu.memory_space<vmem>>, vector<1x32x32xf32>
    %105 = vector.shape_cast %104 : vector<1x32x32xf32> to vector<32x32xf32>
    %cst_45 = arith.constant dense<0.000000e+00> : vector<10x32xf32>
    %106 = tpu.matmul %103, %105, %cst_45 {dimension_numbers = #tpu.dot_dimension_numbers<[1], [0], [0], [1], [0, 0, 1, 1], [], []>} : vector<10x32xf32>, vector<32x32xf32>, vector<10x32xf32> -> vector<10x32xf32>
    %107 = arith.addf %4, %106 : vector<10x32xf32>
    %c2 = arith.constant 2 : index
    %c0_46 = arith.constant 0 : index
    %108 = vector.load %arg11[%c2, %c0_46] : memref<15x32xf32, #tpu.memory_space<vmem>>, vector<1x32xf32>
    %109 = vector.broadcast %108 : vector<1x32xf32> to vector<10x32xf32>
    %110 = arith.addf %107, %109 : vector<10x32xf32>
    %c3 = arith.constant 3 : index
    %c0_47 = arith.constant 0 : index
    %111 = vector.load %arg11[%c3, %c0_47] : memref<15x32xf32, #tpu.memory_space<vmem>>, vector<1x32xf32>
    %c4 = arith.constant 4 : index
    %c0_48 = arith.constant 0 : index
    %112 = vector.load %arg11[%c4, %c0_48] : memref<15x32xf32, #tpu.memory_space<vmem>>, vector<1x32xf32>
    %cst_49 = arith.constant dense<0.000000e+00> : vector<10xf32>
    %113 = vector.multi_reduction <add>, %110, %cst_49 [1] : vector<10x32xf32> to vector<10xf32>
    %114 = vector.shape_cast %113 : vector<10xf32> to vector<10x1xf32>
    %cst_50 = arith.constant 3.200000e+01 : f32
    %115 = vector.broadcast %cst_50 : f32 to vector<10x1xf32>
    %116 = arith.divf %114, %115 : vector<10x1xf32>
    %117 = vector.broadcast %116 : vector<10x1xf32> to vector<10x32xf32>
    %118 = arith.subf %110, %117 : vector<10x32xf32>
    %119 = arith.mulf %118, %118 : vector<10x32xf32>
    %cst_51 = arith.constant dense<0.000000e+00> : vector<10xf32>
    %120 = vector.multi_reduction <add>, %119, %cst_51 [1] : vector<10x32xf32> to vector<10xf32>
    %121 = vector.shape_cast %120 : vector<10xf32> to vector<10x1xf32>
    %cst_52 = arith.constant 3.200000e+01 : f32
    %122 = vector.broadcast %cst_52 : f32 to vector<10x1xf32>
    %123 = arith.divf %121, %122 : vector<10x1xf32>
    %cst_53 = arith.constant 9.99999996E-13 : f32
    %124 = vector.broadcast %cst_53 : f32 to vector<10x1xf32>
    %125 = arith.addf %123, %124 : vector<10x1xf32>
    %126 = math.rsqrt %125 : vector<10x1xf32>
    %127 = vector.broadcast %126 : vector<10x1xf32> to vector<10x32xf32>
    %128 = arith.mulf %118, %127 : vector<10x32xf32>
    %129 = vector.broadcast %111 : vector<1x32xf32> to vector<10x32xf32>
    %130 = arith.mulf %128, %129 : vector<10x32xf32>
    %131 = vector.broadcast %112 : vector<1x32xf32> to vector<10x32xf32>
    %132 = arith.addf %130, %131 : vector<10x32xf32>
    %c0_54 = arith.constant 0 : index
    %c0_55 = arith.constant 0 : index
    %c0_56 = arith.constant 0 : index
    %133 = vector.load %arg8[%c0_54, %c0_55, %c0_56] : memref<2x32x64xf32, #tpu.memory_space<vmem>>, vector<1x32x64xf32>
    %134 = vector.shape_cast %133 : vector<1x32x64xf32> to vector<32x64xf32>
    %cst_57 = arith.constant dense<0.000000e+00> : vector<10x64xf32>
    %135 = tpu.matmul %132, %134, %cst_57 {dimension_numbers = #tpu.dot_dimension_numbers<[1], [0], [0], [1], [0, 0, 1, 1], [], []>} : vector<10x32xf32>, vector<32x64xf32>, vector<10x64xf32> -> vector<10x64xf32>
    %c0_58 = arith.constant 0 : index
    %c0_59 = arith.constant 0 : index
    %c0_60 = arith.constant 0 : index
    %136 = vector.load %arg9[%c0_58, %c0_59, %c0_60] : memref<2x1x64xf32, #tpu.memory_space<vmem>>, vector<1x1x64xf32>
    %137 = vector.shape_cast %136 : vector<1x1x64xf32> to vector<1x64xf32>
    %138 = vector.broadcast %137 : vector<1x64xf32> to vector<10x64xf32>
    %139 = arith.addf %135, %138 : vector<10x64xf32>
    %cst_61 = arith.constant 5.000000e-01 : f32
    %140 = vector.broadcast %cst_61 : f32 to vector<10x64xf32>
    %141 = arith.mulf %140, %139 : vector<10x64xf32>
    %cst_62 = arith.constant 4.471500e-02 : f32
    %142 = vector.broadcast %cst_62 : f32 to vector<10x64xf32>
    %143 = arith.mulf %142, %139 : vector<10x64xf32>
    %144 = arith.mulf %143, %139 : vector<10x64xf32>
    %145 = arith.mulf %144, %139 : vector<10x64xf32>
    %146 = arith.addf %139, %145 : vector<10x64xf32>
    %cst_63 = arith.constant 0.797884583 : f32
    %147 = vector.broadcast %cst_63 : f32 to vector<10x64xf32>
    %148 = arith.mulf %147, %146 : vector<10x64xf32>
    %149 = math.tanh %148 : vector<10x64xf32>
    %cst_64 = arith.constant 1.000000e+00 : f32
    %150 = vector.broadcast %cst_64 : f32 to vector<10x64xf32>
    %151 = arith.addf %150, %149 : vector<10x64xf32>
    %152 = arith.mulf %141, %151 : vector<10x64xf32>
    %c0_65 = arith.constant 0 : index
    %c0_66 = arith.constant 0 : index
    %c0_67 = arith.constant 0 : index
    %153 = vector.load %arg10[%c0_65, %c0_66, %c0_67] : memref<2x64x32xf32, #tpu.memory_space<vmem>>, vector<1x64x32xf32>
    %154 = vector.shape_cast %153 : vector<1x64x32xf32> to vector<64x32xf32>
    %cst_68 = arith.constant dense<0.000000e+00> : vector<10x32xf32>
    %155 = tpu.matmul %152, %154, %cst_68 {dimension_numbers = #tpu.dot_dimension_numbers<[1], [0], [0], [1], [0, 0, 1, 1], [], []>} : vector<10x64xf32>, vector<64x32xf32>, vector<10x32xf32> -> vector<10x32xf32>
    %156 = arith.addf %110, %155 : vector<10x32xf32>
    %c5 = arith.constant 5 : index
    %c0_69 = arith.constant 0 : index
    %157 = vector.load %arg11[%c5, %c0_69] : memref<15x32xf32, #tpu.memory_space<vmem>>, vector<1x32xf32>
    %158 = vector.broadcast %157 : vector<1x32xf32> to vector<10x32xf32>
    %159 = arith.addf %156, %158 : vector<10x32xf32>
    %c6 = arith.constant 6 : index
    %c0_70 = arith.constant 0 : index
    %160 = vector.load %arg11[%c6, %c0_70] : memref<15x32xf32, #tpu.memory_space<vmem>>, vector<1x32xf32>
    %c7 = arith.constant 7 : index
    %c0_71 = arith.constant 0 : index
    %161 = vector.load %arg11[%c7, %c0_71] : memref<15x32xf32, #tpu.memory_space<vmem>>, vector<1x32xf32>
    %cst_72 = arith.constant dense<0.000000e+00> : vector<10xf32>
    %162 = vector.multi_reduction <add>, %159, %cst_72 [1] : vector<10x32xf32> to vector<10xf32>
    %163 = vector.shape_cast %162 : vector<10xf32> to vector<10x1xf32>
    %cst_73 = arith.constant 3.200000e+01 : f32
    %164 = vector.broadcast %cst_73 : f32 to vector<10x1xf32>
    %165 = arith.divf %163, %164 : vector<10x1xf32>
    %166 = vector.broadcast %165 : vector<10x1xf32> to vector<10x32xf32>
    %167 = arith.subf %159, %166 : vector<10x32xf32>
    %168 = arith.mulf %167, %167 : vector<10x32xf32>
    %cst_74 = arith.constant dense<0.000000e+00> : vector<10xf32>
    %169 = vector.multi_reduction <add>, %168, %cst_74 [1] : vector<10x32xf32> to vector<10xf32>
    %170 = vector.shape_cast %169 : vector<10xf32> to vector<10x1xf32>
    %cst_75 = arith.constant 3.200000e+01 : f32
    %171 = vector.broadcast %cst_75 : f32 to vector<10x1xf32>
    %172 = arith.divf %170, %171 : vector<10x1xf32>
    %cst_76 = arith.constant 9.99999996E-13 : f32
    %173 = vector.broadcast %cst_76 : f32 to vector<10x1xf32>
    %174 = arith.addf %172, %173 : vector<10x1xf32>
    %175 = math.rsqrt %174 : vector<10x1xf32>
    %176 = vector.broadcast %175 : vector<10x1xf32> to vector<10x32xf32>
    %177 = arith.mulf %167, %176 : vector<10x32xf32>
    %178 = vector.broadcast %160 : vector<1x32xf32> to vector<10x32xf32>
    %179 = arith.mulf %177, %178 : vector<10x32xf32>
    %180 = vector.broadcast %161 : vector<1x32xf32> to vector<10x32xf32>
    %181 = arith.addf %179, %180 : vector<10x32xf32>
    %c1_77 = arith.constant 1 : index
    %c0_78 = arith.constant 0 : index
    %c0_79 = arith.constant 0 : index
    %182 = vector.load %arg5[%c1_77, %c0_78, %c0_79] : memref<2x32x96xf32, #tpu.memory_space<vmem>>, vector<1x32x96xf32>
    %183 = vector.shape_cast %182 : vector<1x32x96xf32> to vector<32x96xf32>
    %cst_80 = arith.constant dense<0.000000e+00> : vector<10x96xf32>
    %184 = tpu.matmul %181, %183, %cst_80 {dimension_numbers = #tpu.dot_dimension_numbers<[1], [0], [0], [1], [0, 0, 1, 1], [], []>} : vector<10x32xf32>, vector<32x96xf32>, vector<10x96xf32> -> vector<10x96xf32>
    %c1_81 = arith.constant 1 : index
    %c0_82 = arith.constant 0 : index
    %c0_83 = arith.constant 0 : index
    %185 = vector.load %arg6[%c1_81, %c0_82, %c0_83] : memref<2x1x96xf32, #tpu.memory_space<vmem>>, vector<1x1x96xf32>
    %186 = vector.shape_cast %185 : vector<1x1x96xf32> to vector<1x96xf32>
    %187 = vector.broadcast %186 : vector<1x96xf32> to vector<10x96xf32>
    %188 = arith.addf %184, %187 : vector<10x96xf32>
    %189 = vector.extract_strided_slice %188 {offsets = [0, 0], sizes = [10, 8], strides = [1, 1]} : vector<10x96xf32> to vector<10x8xf32>
    %190 = vector.extract_strided_slice %188 {offsets = [0, 32], sizes = [10, 8], strides = [1, 1]} : vector<10x96xf32> to vector<10x8xf32>
    %191 = vector.extract_strided_slice %188 {offsets = [0, 64], sizes = [10, 8], strides = [1, 1]} : vector<10x96xf32> to vector<10x8xf32>
    %cst_84 = arith.constant dense<0.000000e+00> : vector<10x10xf32>
    %192 = tpu.matmul %189, %190, %cst_84 {dimension_numbers = #tpu.dot_dimension_numbers<[1], [1], [0], [0], [0, 0, 1, 0], [], []>} : vector<10x8xf32>, vector<10x8xf32>, vector<10x10xf32> -> vector<10x10xf32>
    %cst_85 = arith.constant 0.353553385 : f32
    %193 = vector.broadcast %cst_85 : f32 to vector<10x10xf32>
    %194 = arith.mulf %192, %193 : vector<10x10xf32>
    %195 = arith.addf %194, %5 : vector<10x10xf32>
    %cst_86 = arith.constant dense<0xFF800000> : vector<10xf32>
    %196 = vector.multi_reduction <maximumf>, %195, %cst_86 [1] : vector<10x10xf32> to vector<10xf32>
    %197 = vector.shape_cast %196 : vector<10xf32> to vector<10x1xf32>
    %198 = vector.broadcast %197 : vector<10x1xf32> to vector<10x10xf32>
    %199 = arith.subf %195, %198 : vector<10x10xf32>
    %200 = math.exp %199 : vector<10x10xf32>
    %cst_87 = arith.constant dense<0.000000e+00> : vector<10xf32>
    %201 = vector.multi_reduction <add>, %200, %cst_87 [1] : vector<10x10xf32> to vector<10xf32>
    %202 = vector.shape_cast %201 : vector<10xf32> to vector<10x1xf32>
    %203 = vector.broadcast %202 : vector<10x1xf32> to vector<10x10xf32>
    %204 = arith.divf %200, %203 : vector<10x10xf32>
    %cst_88 = arith.constant dense<0.000000e+00> : vector<10x8xf32>
    %205 = tpu.matmul %204, %191, %cst_88 {dimension_numbers = #tpu.dot_dimension_numbers<[1], [0], [0], [1], [0, 0, 1, 1], [], []>} : vector<10x10xf32>, vector<10x8xf32>, vector<10x8xf32> -> vector<10x8xf32>
    %206 = vector.extract_strided_slice %188 {offsets = [0, 8], sizes = [10, 8], strides = [1, 1]} : vector<10x96xf32> to vector<10x8xf32>
    %207 = vector.extract_strided_slice %188 {offsets = [0, 40], sizes = [10, 8], strides = [1, 1]} : vector<10x96xf32> to vector<10x8xf32>
    %208 = vector.extract_strided_slice %188 {offsets = [0, 72], sizes = [10, 8], strides = [1, 1]} : vector<10x96xf32> to vector<10x8xf32>
    %cst_89 = arith.constant dense<0.000000e+00> : vector<10x10xf32>
    %209 = tpu.matmul %206, %207, %cst_89 {dimension_numbers = #tpu.dot_dimension_numbers<[1], [1], [0], [0], [0, 0, 1, 0], [], []>} : vector<10x8xf32>, vector<10x8xf32>, vector<10x10xf32> -> vector<10x10xf32>
    %cst_90 = arith.constant 0.353553385 : f32
    %210 = vector.broadcast %cst_90 : f32 to vector<10x10xf32>
    %211 = arith.mulf %209, %210 : vector<10x10xf32>
    %212 = arith.addf %211, %5 : vector<10x10xf32>
    %cst_91 = arith.constant dense<0xFF800000> : vector<10xf32>
    %213 = vector.multi_reduction <maximumf>, %212, %cst_91 [1] : vector<10x10xf32> to vector<10xf32>
    %214 = vector.shape_cast %213 : vector<10xf32> to vector<10x1xf32>
    %215 = vector.broadcast %214 : vector<10x1xf32> to vector<10x10xf32>
    %216 = arith.subf %212, %215 : vector<10x10xf32>
    %217 = math.exp %216 : vector<10x10xf32>
    %cst_92 = arith.constant dense<0.000000e+00> : vector<10xf32>
    %218 = vector.multi_reduction <add>, %217, %cst_92 [1] : vector<10x10xf32> to vector<10xf32>
    %219 = vector.shape_cast %218 : vector<10xf32> to vector<10x1xf32>
    %220 = vector.broadcast %219 : vector<10x1xf32> to vector<10x10xf32>
    %221 = arith.divf %217, %220 : vector<10x10xf32>
    %cst_93 = arith.constant dense<0.000000e+00> : vector<10x8xf32>
    %222 = tpu.matmul %221, %208, %cst_93 {dimension_numbers = #tpu.dot_dimension_numbers<[1], [0], [0], [1], [0, 0, 1, 1], [], []>} : vector<10x10xf32>, vector<10x8xf32>, vector<10x8xf32> -> vector<10x8xf32>
    %223 = vector.extract_strided_slice %188 {offsets = [0, 16], sizes = [10, 8], strides = [1, 1]} : vector<10x96xf32> to vector<10x8xf32>
    %224 = vector.extract_strided_slice %188 {offsets = [0, 48], sizes = [10, 8], strides = [1, 1]} : vector<10x96xf32> to vector<10x8xf32>
    %225 = vector.extract_strided_slice %188 {offsets = [0, 80], sizes = [10, 8], strides = [1, 1]} : vector<10x96xf32> to vector<10x8xf32>
    %cst_94 = arith.constant dense<0.000000e+00> : vector<10x10xf32>
    %226 = tpu.matmul %223, %224, %cst_94 {dimension_numbers = #tpu.dot_dimension_numbers<[1], [1], [0], [0], [0, 0, 1, 0], [], []>} : vector<10x8xf32>, vector<10x8xf32>, vector<10x10xf32> -> vector<10x10xf32>
    %cst_95 = arith.constant 0.353553385 : f32
    %227 = vector.broadcast %cst_95 : f32 to vector<10x10xf32>
    %228 = arith.mulf %226, %227 : vector<10x10xf32>
    %229 = arith.addf %228, %5 : vector<10x10xf32>
    %cst_96 = arith.constant dense<0xFF800000> : vector<10xf32>
    %230 = vector.multi_reduction <maximumf>, %229, %cst_96 [1] : vector<10x10xf32> to vector<10xf32>
    %231 = vector.shape_cast %230 : vector<10xf32> to vector<10x1xf32>
    %232 = vector.broadcast %231 : vector<10x1xf32> to vector<10x10xf32>
    %233 = arith.subf %229, %232 : vector<10x10xf32>
    %234 = math.exp %233 : vector<10x10xf32>
    %cst_97 = arith.constant dense<0.000000e+00> : vector<10xf32>
    %235 = vector.multi_reduction <add>, %234, %cst_97 [1] : vector<10x10xf32> to vector<10xf32>
    %236 = vector.shape_cast %235 : vector<10xf32> to vector<10x1xf32>
    %237 = vector.broadcast %236 : vector<10x1xf32> to vector<10x10xf32>
    %238 = arith.divf %234, %237 : vector<10x10xf32>
    %cst_98 = arith.constant dense<0.000000e+00> : vector<10x8xf32>
    %239 = tpu.matmul %238, %225, %cst_98 {dimension_numbers = #tpu.dot_dimension_numbers<[1], [0], [0], [1], [0, 0, 1, 1], [], []>} : vector<10x10xf32>, vector<10x8xf32>, vector<10x8xf32> -> vector<10x8xf32>
    %240 = vector.extract_strided_slice %188 {offsets = [0, 24], sizes = [10, 8], strides = [1, 1]} : vector<10x96xf32> to vector<10x8xf32>
    %241 = vector.extract_strided_slice %188 {offsets = [0, 56], sizes = [10, 8], strides = [1, 1]} : vector<10x96xf32> to vector<10x8xf32>
    %242 = vector.extract_strided_slice %188 {offsets = [0, 88], sizes = [10, 8], strides = [1, 1]} : vector<10x96xf32> to vector<10x8xf32>
    %cst_99 = arith.constant dense<0.000000e+00> : vector<10x10xf32>
    %243 = tpu.matmul %240, %241, %cst_99 {dimension_numbers = #tpu.dot_dimension_numbers<[1], [1], [0], [0], [0, 0, 1, 0], [], []>} : vector<10x8xf32>, vector<10x8xf32>, vector<10x10xf32> -> vector<10x10xf32>
    %cst_100 = arith.constant 0.353553385 : f32
    %244 = vector.broadcast %cst_100 : f32 to vector<10x10xf32>
    %245 = arith.mulf %243, %244 : vector<10x10xf32>
    %246 = arith.addf %245, %5 : vector<10x10xf32>
    %cst_101 = arith.constant dense<0xFF800000> : vector<10xf32>
    %247 = vector.multi_reduction <maximumf>, %246, %cst_101 [1] : vector<10x10xf32> to vector<10xf32>
    %248 = vector.shape_cast %247 : vector<10xf32> to vector<10x1xf32>
    %249 = vector.broadcast %248 : vector<10x1xf32> to vector<10x10xf32>
    %250 = arith.subf %246, %249 : vector<10x10xf32>
    %251 = math.exp %250 : vector<10x10xf32>
    %cst_102 = arith.constant dense<0.000000e+00> : vector<10xf32>
    %252 = vector.multi_reduction <add>, %251, %cst_102 [1] : vector<10x10xf32> to vector<10xf32>
    %253 = vector.shape_cast %252 : vector<10xf32> to vector<10x1xf32>
    %254 = vector.broadcast %253 : vector<10x1xf32> to vector<10x10xf32>
    %255 = arith.divf %251, %254 : vector<10x10xf32>
    %cst_103 = arith.constant dense<0.000000e+00> : vector<10x8xf32>
    %256 = tpu.matmul %255, %242, %cst_103 {dimension_numbers = #tpu.dot_dimension_numbers<[1], [0], [0], [1], [0, 0, 1, 1], [], []>} : vector<10x10xf32>, vector<10x8xf32>, vector<10x8xf32> -> vector<10x8xf32>
    %257 = tpu.concatenate %205, %222, %239, %256 in 1 : vector<10x8xf32>, vector<10x8xf32>, vector<10x8xf32>, vector<10x8xf32> -> vector<10x32xf32>
    %c1_104 = arith.constant 1 : index
    %c0_105 = arith.constant 0 : index
    %c0_106 = arith.constant 0 : index
    %258 = vector.load %arg7[%c1_104, %c0_105, %c0_106] : memref<3x32x32xf32, #tpu.memory_space<vmem>>, vector<1x32x32xf32>
    %259 = vector.shape_cast %258 : vector<1x32x32xf32> to vector<32x32xf32>
    %cst_107 = arith.constant dense<0.000000e+00> : vector<10x32xf32>
    %260 = tpu.matmul %257, %259, %cst_107 {dimension_numbers = #tpu.dot_dimension_numbers<[1], [0], [0], [1], [0, 0, 1, 1], [], []>} : vector<10x32xf32>, vector<32x32xf32>, vector<10x32xf32> -> vector<10x32xf32>
    %261 = arith.addf %159, %260 : vector<10x32xf32>
    %c8 = arith.constant 8 : index
    %c0_108 = arith.constant 0 : index
    %262 = vector.load %arg11[%c8, %c0_108] : memref<15x32xf32, #tpu.memory_space<vmem>>, vector<1x32xf32>
    %263 = vector.broadcast %262 : vector<1x32xf32> to vector<10x32xf32>
    %264 = arith.addf %261, %263 : vector<10x32xf32>
    %c9 = arith.constant 9 : index
    %c0_109 = arith.constant 0 : index
    %265 = vector.load %arg11[%c9, %c0_109] : memref<15x32xf32, #tpu.memory_space<vmem>>, vector<1x32xf32>
    %c10 = arith.constant 10 : index
    %c0_110 = arith.constant 0 : index
    %266 = vector.load %arg11[%c10, %c0_110] : memref<15x32xf32, #tpu.memory_space<vmem>>, vector<1x32xf32>
    %cst_111 = arith.constant dense<0.000000e+00> : vector<10xf32>
    %267 = vector.multi_reduction <add>, %264, %cst_111 [1] : vector<10x32xf32> to vector<10xf32>
    %268 = vector.shape_cast %267 : vector<10xf32> to vector<10x1xf32>
    %cst_112 = arith.constant 3.200000e+01 : f32
    %269 = vector.broadcast %cst_112 : f32 to vector<10x1xf32>
    %270 = arith.divf %268, %269 : vector<10x1xf32>
    %271 = vector.broadcast %270 : vector<10x1xf32> to vector<10x32xf32>
    %272 = arith.subf %264, %271 : vector<10x32xf32>
    %273 = arith.mulf %272, %272 : vector<10x32xf32>
    %cst_113 = arith.constant dense<0.000000e+00> : vector<10xf32>
    %274 = vector.multi_reduction <add>, %273, %cst_113 [1] : vector<10x32xf32> to vector<10xf32>
    %275 = vector.shape_cast %274 : vector<10xf32> to vector<10x1xf32>
    %cst_114 = arith.constant 3.200000e+01 : f32
    %276 = vector.broadcast %cst_114 : f32 to vector<10x1xf32>
    %277 = arith.divf %275, %276 : vector<10x1xf32>
    %cst_115 = arith.constant 9.99999996E-13 : f32
    %278 = vector.broadcast %cst_115 : f32 to vector<10x1xf32>
    %279 = arith.addf %277, %278 : vector<10x1xf32>
    %280 = math.rsqrt %279 : vector<10x1xf32>
    %281 = vector.broadcast %280 : vector<10x1xf32> to vector<10x32xf32>
    %282 = arith.mulf %272, %281 : vector<10x32xf32>
    %283 = vector.broadcast %265 : vector<1x32xf32> to vector<10x32xf32>
    %284 = arith.mulf %282, %283 : vector<10x32xf32>
    %285 = vector.broadcast %266 : vector<1x32xf32> to vector<10x32xf32>
    %286 = arith.addf %284, %285 : vector<10x32xf32>
    %c1_116 = arith.constant 1 : index
    %c0_117 = arith.constant 0 : index
    %c0_118 = arith.constant 0 : index
    %287 = vector.load %arg8[%c1_116, %c0_117, %c0_118] : memref<2x32x64xf32, #tpu.memory_space<vmem>>, vector<1x32x64xf32>
    %288 = vector.shape_cast %287 : vector<1x32x64xf32> to vector<32x64xf32>
    %cst_119 = arith.constant dense<0.000000e+00> : vector<10x64xf32>
    %289 = tpu.matmul %286, %288, %cst_119 {dimension_numbers = #tpu.dot_dimension_numbers<[1], [0], [0], [1], [0, 0, 1, 1], [], []>} : vector<10x32xf32>, vector<32x64xf32>, vector<10x64xf32> -> vector<10x64xf32>
    %c1_120 = arith.constant 1 : index
    %c0_121 = arith.constant 0 : index
    %c0_122 = arith.constant 0 : index
    %290 = vector.load %arg9[%c1_120, %c0_121, %c0_122] : memref<2x1x64xf32, #tpu.memory_space<vmem>>, vector<1x1x64xf32>
    %291 = vector.shape_cast %290 : vector<1x1x64xf32> to vector<1x64xf32>
    %292 = vector.broadcast %291 : vector<1x64xf32> to vector<10x64xf32>
    %293 = arith.addf %289, %292 : vector<10x64xf32>
    %cst_123 = arith.constant 5.000000e-01 : f32
    %294 = vector.broadcast %cst_123 : f32 to vector<10x64xf32>
    %295 = arith.mulf %294, %293 : vector<10x64xf32>
    %cst_124 = arith.constant 4.471500e-02 : f32
    %296 = vector.broadcast %cst_124 : f32 to vector<10x64xf32>
    %297 = arith.mulf %296, %293 : vector<10x64xf32>
    %298 = arith.mulf %297, %293 : vector<10x64xf32>
    %299 = arith.mulf %298, %293 : vector<10x64xf32>
    %300 = arith.addf %293, %299 : vector<10x64xf32>
    %cst_125 = arith.constant 0.797884583 : f32
    %301 = vector.broadcast %cst_125 : f32 to vector<10x64xf32>
    %302 = arith.mulf %301, %300 : vector<10x64xf32>
    %303 = math.tanh %302 : vector<10x64xf32>
    %cst_126 = arith.constant 1.000000e+00 : f32
    %304 = vector.broadcast %cst_126 : f32 to vector<10x64xf32>
    %305 = arith.addf %304, %303 : vector<10x64xf32>
    %306 = arith.mulf %295, %305 : vector<10x64xf32>
    %c1_127 = arith.constant 1 : index
    %c0_128 = arith.constant 0 : index
    %c0_129 = arith.constant 0 : index
    %307 = vector.load %arg10[%c1_127, %c0_128, %c0_129] : memref<2x64x32xf32, #tpu.memory_space<vmem>>, vector<1x64x32xf32>
    %308 = vector.shape_cast %307 : vector<1x64x32xf32> to vector<64x32xf32>
    %cst_130 = arith.constant dense<0.000000e+00> : vector<10x32xf32>
    %309 = tpu.matmul %306, %308, %cst_130 {dimension_numbers = #tpu.dot_dimension_numbers<[1], [0], [0], [1], [0, 0, 1, 1], [], []>} : vector<10x64xf32>, vector<64x32xf32>, vector<10x32xf32> -> vector<10x32xf32>
    %310 = arith.addf %264, %309 : vector<10x32xf32>
    %c11 = arith.constant 11 : index
    %c0_131 = arith.constant 0 : index
    %311 = vector.load %arg11[%c11, %c0_131] : memref<15x32xf32, #tpu.memory_space<vmem>>, vector<1x32xf32>
    %312 = vector.broadcast %311 : vector<1x32xf32> to vector<10x32xf32>
    %313 = arith.addf %310, %312 : vector<10x32xf32>
    %314 = tpu.iota {dimensions = array<i32: 1>} : vector<2x10xi32>
    %315 = tpu.iota {dimensions = array<i32: 0>} : vector<2x10xi32>
    %c5_i32 = arith.constant 5 : i32
    %316 = vector.broadcast %c5_i32 : i32 to vector<2x10xi32>
    %317 = arith.muli %316, %315 : vector<2x10xi32>
    %318 = arith.cmpi eq, %314, %317 : vector<2x10xi32>
    %cst_132 = arith.constant 1.000000e+00 : f32
    %cst_133 = arith.constant 0.000000e+00 : f32
    %319 = vector.broadcast %cst_132 : f32 to vector<2x10xf32>
    %320 = vector.broadcast %cst_133 : f32 to vector<2x10xf32>
    %321 = arith.select %318, %319, %320 : vector<2x10xi1>, vector<2x10xf32>
    %cst_134 = arith.constant dense<0.000000e+00> : vector<2x32xf32>
    %322 = tpu.matmul %321, %313, %cst_134 {dimension_numbers = #tpu.dot_dimension_numbers<[1], [0], [0], [1], [0, 0, 1, 1], [], []>} : vector<2x10xf32>, vector<10x32xf32>, vector<2x32xf32> -> vector<2x32xf32>
    %c12 = arith.constant 12 : index
    %c0_135 = arith.constant 0 : index
    %323 = vector.load %arg11[%c12, %c0_135] : memref<15x32xf32, #tpu.memory_space<vmem>>, vector<1x32xf32>
    %c13 = arith.constant 13 : index
    %c0_136 = arith.constant 0 : index
    %324 = vector.load %arg11[%c13, %c0_136] : memref<15x32xf32, #tpu.memory_space<vmem>>, vector<1x32xf32>
    %cst_137 = arith.constant dense<0.000000e+00> : vector<2xf32>
    %325 = vector.multi_reduction <add>, %322, %cst_137 [1] : vector<2x32xf32> to vector<2xf32>
    %326 = vector.shape_cast %325 : vector<2xf32> to vector<2x1xf32>
    %cst_138 = arith.constant 3.200000e+01 : f32
    %327 = vector.broadcast %cst_138 : f32 to vector<2x1xf32>
    %328 = arith.divf %326, %327 : vector<2x1xf32>
    %329 = vector.broadcast %328 : vector<2x1xf32> to vector<2x32xf32>
    %330 = arith.subf %322, %329 : vector<2x32xf32>
    %331 = arith.mulf %330, %330 : vector<2x32xf32>
    %cst_139 = arith.constant dense<0.000000e+00> : vector<2xf32>
    %332 = vector.multi_reduction <add>, %331, %cst_139 [1] : vector<2x32xf32> to vector<2xf32>
    %333 = vector.shape_cast %332 : vector<2xf32> to vector<2x1xf32>
    %cst_140 = arith.constant 3.200000e+01 : f32
    %334 = vector.broadcast %cst_140 : f32 to vector<2x1xf32>
    %335 = arith.divf %333, %334 : vector<2x1xf32>
    %cst_141 = arith.constant 9.99999996E-13 : f32
    %336 = vector.broadcast %cst_141 : f32 to vector<2x1xf32>
    %337 = arith.addf %335, %336 : vector<2x1xf32>
    %338 = math.rsqrt %337 : vector<2x1xf32>
    %339 = vector.broadcast %338 : vector<2x1xf32> to vector<2x32xf32>
    %340 = arith.mulf %330, %339 : vector<2x32xf32>
    %341 = vector.broadcast %323 : vector<1x32xf32> to vector<2x32xf32>
    %342 = arith.mulf %340, %341 : vector<2x32xf32>
    %343 = vector.broadcast %324 : vector<1x32xf32> to vector<2x32xf32>
    %344 = arith.addf %342, %343 : vector<2x32xf32>
    %c2_142 = arith.constant 2 : index
    %c0_143 = arith.constant 0 : index
    %c0_144 = arith.constant 0 : index
    %345 = vector.load %arg7[%c2_142, %c0_143, %c0_144] : memref<3x32x32xf32, #tpu.memory_space<vmem>>, vector<1x32x32xf32>
    %346 = vector.shape_cast %345 : vector<1x32x32xf32> to vector<32x32xf32>
    %cst_145 = arith.constant dense<0.000000e+00> : vector<2x32xf32>
    %347 = tpu.matmul %344, %346, %cst_145 {dimension_numbers = #tpu.dot_dimension_numbers<[1], [0], [0], [1], [0, 0, 1, 1], [], []>} : vector<2x32xf32>, vector<32x32xf32>, vector<2x32xf32> -> vector<2x32xf32>
    %c14 = arith.constant 14 : index
    %c0_146 = arith.constant 0 : index
    %348 = vector.load %arg11[%c14, %c0_146] : memref<15x32xf32, #tpu.memory_space<vmem>>, vector<1x32xf32>
    %349 = vector.broadcast %348 : vector<1x32xf32> to vector<2x32xf32>
    %350 = arith.addf %347, %349 : vector<2x32xf32>
    %351 = math.tanh %350 : vector<2x32xf32>
    %c0_147 = arith.constant 0 : index
    %c0_148 = arith.constant 0 : index
    %352 = vector.load %arg12[%c0_147, %c0_148] : memref<2x32xf32, #tpu.memory_space<vmem>>, vector<2x32xf32>
    tpu.vector_store %arg12[%c0_147, %c0_148], %351 {strides = array<i32>} : memref<2x32xf32, #tpu.memory_space<vmem>>, vector<2x32xf32>,
    return
  }
  func.func @transform_0(%arg0: i32) -> (i32, i32) {
    %c0_i32 = arith.constant 0 : i32
    %c0_i32_0 = arith.constant 0 : i32
    return %arg0, %c0_i32 : i32, i32
  }
  func.func @transform_1(%arg0: i32) -> (i32, i32) {
    %c0_i32 = arith.constant 0 : i32
    %c0_i32_0 = arith.constant 0 : i32
    %c0_i32_1 = arith.constant 0 : i32
    return %c0_i32, %c0_i32_0 : i32, i32
  }
  func.func @transform_2(%arg0: i32) -> (i32, i32) {
    %c0_i32 = arith.constant 0 : i32
    %c0_i32_0 = arith.constant 0 : i32
    %c0_i32_1 = arith.constant 0 : i32
    return %c0_i32, %c0_i32_0 : i32, i32
  }
  func.func @transform_3(%arg0: i32) -> (i32, i32) {
    %c0_i32 = arith.constant 0 : i32
    %c0_i32_0 = arith.constant 0 : i32
    %c0_i32_1 = arith.constant 0 : i32
    return %c0_i32, %c0_i32_0 : i32, i32
  }
  func.func @transform_4(%arg0: i32) -> (i32, i32, i32) {
    %c0_i32 = arith.constant 0 : i32
    %c0_i32_0 = arith.constant 0 : i32
    %c0_i32_1 = arith.constant 0 : i32
    %c0_i32_2 = arith.constant 0 : i32
    return %c0_i32, %c0_i32_0, %c0_i32_1 : i32, i32, i32
  }
  func.func @transform_5(%arg0: i32) -> (i32, i32, i32) {
    %c0_i32 = arith.constant 0 : i32
    %c0_i32_0 = arith.constant 0 : i32
    %c0_i32_1 = arith.constant 0 : i32
    %c0_i32_2 = arith.constant 0 : i32
    return %c0_i32, %c0_i32_0, %c0_i32_1 : i32, i32, i32
  }
  func.func @transform_6(%arg0: i32) -> (i32, i32, i32) {
    %c0_i32 = arith.constant 0 : i32
    %c0_i32_0 = arith.constant 0 : i32
    %c0_i32_1 = arith.constant 0 : i32
    %c0_i32_2 = arith.constant 0 : i32
    return %c0_i32, %c0_i32_0, %c0_i32_1 : i32, i32, i32
  }
  func.func @transform_7(%arg0: i32) -> (i32, i32, i32) {
    %c0_i32 = arith.constant 0 : i32
    %c0_i32_0 = arith.constant 0 : i32
    %c0_i32_1 = arith.constant 0 : i32
    %c0_i32_2 = arith.constant 0 : i32
    return %c0_i32, %c0_i32_0, %c0_i32_1 : i32, i32, i32
  }
  func.func @transform_8(%arg0: i32) -> (i32, i32, i32) {
    %c0_i32 = arith.constant 0 : i32
    %c0_i32_0 = arith.constant 0 : i32
    %c0_i32_1 = arith.constant 0 : i32
    %c0_i32_2 = arith.constant 0 : i32
    return %c0_i32, %c0_i32_0, %c0_i32_1 : i32, i32, i32
  }
  func.func @transform_9(%arg0: i32) -> (i32, i32, i32) {
    %c0_i32 = arith.constant 0 : i32
    %c0_i32_0 = arith.constant 0 : i32
    %c0_i32_1 = arith.constant 0 : i32
    %c0_i32_2 = arith.constant 0 : i32
    return %c0_i32, %c0_i32_0, %c0_i32_1 : i32, i32, i32
  }
  func.func @transform_10(%arg0: i32) -> (i32, i32) {
    %c0_i32 = arith.constant 0 : i32
    %c0_i32_0 = arith.constant 0 : i32
    %c0_i32_1 = arith.constant 0 : i32
    return %c0_i32, %c0_i32_0 : i32, i32
  }
  func.func @transform_11(%arg0: i32) -> (i32, i32) {
    %c0_i32 = arith.constant 0 : i32
    %c0_i32_0 = arith.constant 0 : i32
    return %arg0, %c0_i32 : i32, i32
  }
}

</mosaic_0001>

<bundles_post_ra>
// kernel: tile.17
= control target key start
LH: loop header
LB: loop body
LE: loop exit
PB: predicated region body
PF: predicated region fallthrough
CT: control target
= control target key end

     0   :  { %vm3_vm0 = vcmask 261120   ;;  %s34_s0 = inlined_call_operand.vmem [shape: f32[2,5,32], index: 0, kind: input, shape index: {}]   ;;  %s35_s1 = inlined_call_operand.vmem [shape: f32[10,32], index: 1, kind: output, shape index: {}]  }
   0x1   :  { %v2_v0 = vld [vmem:[%s34_s0] sm:$0x1f]   ;;  %v10_v1 = vld [vmem:[%s34_s0 + $0x8] sm:$0x1f]  }
   0x2   :  { %4 = vst.msk [vmem:[%s35_s1] sm:$0x1f] %vm3_vm0, %v2_v0   ;;  %11 = vst.msk [vmem:[%s35_s1 + $0x5] sm:$0x1f] %vm3_vm0, %v10_v1  }

// kernel: _lambda_.1
= control target key start
LH: loop header
LB: loop body
LE: loop exit
PB: predicated region body
PF: predicated region fallthrough
CT: control target
= control target key end

     0   :  { %v3942_v3 = vmov 0.0|0.0   ;;  %vm69_vm0 = vcmask 523264   ;;  %s4700_s0 = inlined_call_operand.vmem [shape: f32[10,192], index: 0, kind: input, shape index: {}]   ;;  %s4701_s1 = inlined_call_operand.vmem [shape: f32[10,32], index: 1, kind: input, shape index: {}]   ;;  %s4702_s2 = inlined_call_operand.vmem [shape: f32[10,10], index: 2, kind: input, shape index: {}]   ;;  %s4703_s3 = inlined_call_operand.vmem [shape: f32[192,32], index: 3, kind: input, shape index: {}]   ;;  %s4704_s4 = inlined_call_operand.vmem [shape: f32[2,32,96], index: 4, kind: input, shape index: {}]   ;;  %s4705_s5 = inlined_call_operand.vmem [shape: f32[2,1,96], index: 5, kind: input, shape index: {}]   ;;  %s4706_s6 = inlined_call_operand.vmem [shape: f32[3,32,32], index: 6, kind: input, shape index: {}]   ;;  %s4707_s7 = inlined_call_operand.vmem [shape: f32[2,32,64], index: 7, kind: input, shape index: {}]   ;;  %s4708_s8 = inlined_call_operand.vmem [shape: f32[2,1,64], index: 8, kind: input, shape index: {}]   ;;  %s4709_s9 = inlined_call_operand.vmem [shape: f32[2,64,32], index: 9, kind: input, shape index: {}]   ;;  %s4710_s10 = inlined_call_operand.vmem [shape: f32[15,32], index: 10, kind: input, shape index: {}]   ;;  %s4711_s11 = inlined_call_operand.hbm [shape: f32[2,32], index: 11, kind: output, shape index: {}]  }
   0x1   :  { %v43_v0 = vld [vmem:[%s4703_s3] sm:$0xff]  ;;  %v44_v1 = vld [vmem:[%s4703_s3 + $0x8] sm:$0xff]  ;;  %v45_v2 = vld [vmem:[%s4703_s3 + $0x10] sm:$0xff]  ;;  %3503 = vmatprep.subr.bf16.mxu0 %v3942_v3 }
   0x2   :  { %v3504_v4 = vpack.c.bf16 %v44_v1, %v43_v0  ;;  %v46_v5 = vld [vmem:[%s4703_s3 + $0x18] sm:$0xff]  ;;  %v47_v7 = vld [vmem:[%s4703_s3 + $0x20] sm:$0xff]  ;;  %v48_v8 = vld [vmem:[%s4703_s3 + $0x28] sm:$0xff] }
   0x3   :  { %v3507_v6 = vpack.c.bf16 %v46_v5, %v45_v2  ;;  %v3510_v9 = vpack.c.bf16 %v48_v8, %v47_v7  ;;  %v49_v10 = vld [vmem:[%s4703_s3 + $0x30] sm:$0xff]  ;;  %v50_v11 = vld [vmem:[%s4703_s3 + $0x38] sm:$0xff]  ;;  %v40_v12 = vld [vmem:[%s4700_s0 + $0x8] sm:$0xff] }
   0x4   :  { %3505 = vmatpush1.bf16.msra.mxu0 %v3504_v4  ;;  %3019 = vmatprep.mubr.msk.f32.mxu0 %vm69_vm0, %v40_v12 }
   0x5   :  { %3506 = vmatprep.subr.bf16.mxu0 %v3942_v3 }
   0x8   :  { %3508 = vmatpush1.bf16.msra.mxu0 %v3507_v6 }
   0x9   :  { %3509 = vmatprep.subr.bf16.mxu0 %v3942_v3 }
   0xa   :  { %16 = vsyncpa [#allocation3], 0  ;;  %v3513_v13 = vpack.c.bf16 %v50_v11, %v49_v10  ;;  %v51_v14 = vld [vmem:[%s4703_s3 + $0x40] sm:$0xff]  ;;  %v52_v15 = vld [vmem:[%s4703_s3 + $0x48] sm:$0xff]  ;;  %vm155_vm1 = vcmask 261120   ;;  %vm159_vm2 = vcmask 254976  }
   0xb   :  { %v3516_v16 = vpack.c.bf16 %v52_v15, %v51_v14  ;;  %v53_v17 = vld [vmem:[%s4703_s3 + $0x50] sm:$0xff]  ;;  %v54_v18 = vld [vmem:[%s4703_s3 + $0x58] sm:$0xff]  ;;  %v55_v20 = vld [vmem:[%s4703_s3 + $0x60] sm:$0xff]  ;;  %vm294_vm3 = vcmask 64512   ;;  %s3943_s12 = smov 96   ;;  %s3944_s13 = smov 88  }
   0xc   :  { %3511 = vmatpush1.bf16.msra.mxu0 %v3510_v9  ;;  %v3519_v19 = vpack.c.bf16 %v54_v18, %v53_v17  ;;  %v56_v21 = vld [vmem:[%s4703_s3 + $0x68] sm:$0xff]  ;;  %v57_v23 = vld [vmem:[%s4703_s3 + $0x70] sm:$0xff]  ;;  %v58_v24 = vld [vmem:[%s4703_s3 + $0x78] sm:$0xff]  ;;  %s3945_s14 = smov 120   ;;  %vm382_vm5 = vcmask 80896   ;;  %vm386_vm6 = vcmask 74752  }
   0xd   :  { %3512 = vmatprep.subr.bf16.mxu0 %v3942_v3  ;;  %v3522_v22 = vpack.c.bf16 %v56_v21, %v55_v20  ;;  %v3525_v25 = vpack.c.bf16 %v58_v24, %v57_v23  ;;  %v59_v26 = vld [vmem:[%s4703_s3 + $0x80] sm:$0xff]  ;;  %v60_v27 = vld [vmem:[%s4703_s3 + $0x88] sm:$0xff]  ;;  %v61_v29 = vld [vmem:[%s4703_s3 + $0x90] sm:$0xff]  ;;  %s3946_s18 = smov 64   ;;  %vm417_vm7 = vcmask 1041408   ;;  %vm3947_vm8 = vmmov 1  }
   0xe   :  { %v3528_v28 = vpack.c.bf16 %v60_v27, %v59_v26  ;;  %v62_v30 = vld [vmem:[%s4703_s3 + $0x98] sm:$0xff]  ;;  %v63_v32 = vld [vmem:[%s4703_s3 + $0xa0] sm:$0xff]  ;;  %v64_v33 = vld [vmem:[%s4703_s3 + $0xa8] sm:$0xff]  ;;  %s3950_s19 = smov 80   ;;  %s3951_s20 = smov 48   ;;  %vm1136_vm10 = vcmask 130048  }
   0xf   :  { %v3531_v31 = vpack.c.bf16 %v62_v30, %v61_v29  ;;  %v3534_v34 = vpack.c.bf16 %v64_v33, %v63_v32  ;;  %v65_v35 = vld [vmem:[%s4703_s3 + $0xb0] sm:$0xff]  ;;  %v66_v36 = vld [vmem:[%s4703_s3 + $0xb8] sm:$0xff]  ;;  %v39_v38 = vld [vmem:[%s4700_s0] sm:$0xff]  ;;  %s3952_s21 = smov 104   ;;  %s3953_s22 = smov 72   ;;  %vm1139_vm11 = vcmask 195584  }
  0x10   :  { %3514 = vmatpush1.bf16.msra.mxu0 %v3513_v13  ;;  %v3537_v37 = vpack.c.bf16 %v66_v36, %v65_v35  ;;  %v42_v39 = vld [vmem:[%s4700_s0 + $0x18] sm:$0x3]  ;;  %v41_v40 = vld [vmem:[%s4700_s0 + $0x10] sm:$0x3]  ;;  %v67_v41 = vld [vmem:[%s4701_s1] sm:$0xff]  ;;  %s3948_s0 = smov 56  }
  0x11   :  { %3515 = vmatprep.subr.bf16.mxu0 %v3942_v3  ;;  %v68_v45 = vld [vmem:[%s4701_s1 + $0x8] sm:$0x3]  ;;  %v196_v61 = vld [vmem:[%s4704_s4] sm:$0xff]  ;;  %v198_v63 = vld [vmem:[%s4704_s4 + $0x10] sm:$0xff]  ;;  %s3949_s1 = smov 112   ;;  %s3954_s23 = smov 40  }
  0x12   :  { %v197_v62 = vld [vmem:[%s4704_s4 + $0x8] sm:$0xff]  ;;  %v199_v1 = vld [vmem:[%s4704_s4 + $0x18] sm:$0xff]  ;;  %v3021_v11 = vld [vmem:[%s4710_s10] ss:$0 sm:$0xff]  ;;  %s3955_s24 = smov 8   ;;  %s4714_s25 = smov 16  }
  0x13   :  { %v3539_v0 = vpack.c.bf16 %v197_v62, %v196_v61  ;;  %v3543_v2 = vpack.c.bf16 %v199_v1, %v198_v63  ;;  %v3022_v13 = vld [vmem:[%s4710_s10 + $0x1] ss:$0 sm:$0xff]  ;;  %v3023_v20 = vld [vmem:[%s4705_s5] ss:$0 sm:$0xff]  ;;  %vm4180_vm4 = vmpackc.low %vm294_vm3, %vm294_vm3  ;;  %s4712_s17 = smov 24   ;;  %vm3958_vm12 = vmmov 0  }
  0x14   :  { %3517 = vmatpush1.bf16.msra.mxu0 %v3516_v16  ;;  %v4193_v33 = vld [vmem:[%s4702_s2] sm:$0xff]  ;;  %v4198_v36 = vld [vmem:[%s4702_s2 + $0x8] sm:$0x3]  ;;  %vm4208_vm9 = vmpackc.low %vm417_vm7, %vm3947_vm8 }
  0x15   :  { %3518 = vmatprep.subr.bf16.mxu0 %v3942_v3  ;;  %3540 = vmatprep.subr.bf16.mxu1 %v3539_v0  ;;  %v3135_v61 = vld [vmem:[%s4706_s6 + $0x40] sm:$0xff] }
  0x16   :  { %3542 = vmatpush3.bf16.msra.mxu1 %v3539_v0 }
  0x17   :  { %3544 = vmatprep.subr.bf16.mxu1 %v3543_v2 }
  0x18   :  { %3520 = vmatpush1.bf16.msra.mxu0 %v3519_v19 }
  0x19   :  { %3521 = vmatprep.subr.bf16.mxu0 %v3942_v3 }
  0x1a   :  { %3546 = vmatpush3.bf16.msra.mxu1 %v3543_v2 }
  0x1c   :  { %3523 = vmatpush1.bf16.msra.mxu0 %v3522_v22 }
  0x1d   :  { %3524 = vmatprep.subr.bf16.mxu0 %v3942_v3 }
  0x20   :  { %3526 = vmatpush1.bf16.msra.mxu0 %v3525_v25 }
  0x21   :  { %3527 = vmatprep.subr.bf16.mxu0 %v3942_v3 }
  0x24   :  { %3529 = vmatpush1.bf16.msra.mxu0 %v3528_v28 }
  0x25   :  { %3530 = vmatprep.subr.bf16.mxu0 %v3942_v3 }
  0x28   :  { %3532 = vmatpush1.bf16.msra.mxu0 %v3531_v31 }
  0x29   :  { %3533 = vmatprep.subr.bf16.mxu0 %v3942_v3 }
  0x2c   :  { %3535 = vmatpush1.bf16.msra.mxu0 %v3534_v34 }
  0x2d   :  { %3536 = vmatprep.subr.bf16.mxu0 %v3942_v3 }
  0x30   :  { %3538 = vmatpush1.bf16.msra.mxu0 %v3537_v37 }
  0x33   :  { %141 = vmatmul.mubr.f32.vlgmr.msra.gmra.mrb[0].mxu0 %v39_v38 }
  0x34   :  { %3020 = vmatprep.mubr.msk.f32.mxu0 %vm69_vm0, %v42_v39 }
  0x37   :  { %146 = vmatmul.mubr.f32.gmra.mrb[2].mxu0 %v41_v40 }
 0x106   :  { %v142_v42 = vpop.f32.mrb[0].mxu0 }
 0x107   :  { %v4122_v43 = vadd.f32 %v142_v42, %v67_v41  ;;  %v144_v44 = vpop.f32.mrb[1].mxu0 }
 0x109   :  { %v156_v46 = vsel %vm155_vm1, %v4122_v43, 0.0 }
 0x10a   :  { %v147_v47 = vpop.f32.mrb[2].mxu0  ;;  %157 = vadd.xlane.f32.xlu0 %v156_v46 }
 0x10b   :  { %v4129_v48 = vadd.f32 %v147_v47, %v68_v45  ;;  %v149_v49 = vpop.f32.mrb[3].mxu0 }
 0x10d   :  { %v160_v50 = vsel %vm159_vm2, %v4129_v48, 0.0 }
 0x10e   :  { %161 = vadd.xlane.f32.xlu0 %v160_v50 }
 0x197   :  { %v158_v51 = vpop.xlane.xlu0 %157 }
 0x198   :  { %v164_v52 = vmul.f32 0.03125, %v158_v51 }
 0x19a   :  { %v166_v53 = vsub.f32 %v4122_v43, %v164_v52 }
 0x19b   :  { %v162_v54 = vpop.xlane.xlu0 %161 }
 0x19c   :  { %v165_v55 = vmul.f32 0.03125, %v162_v54  ;;  %v168_v56 = vmul.f32 %v166_v53, %v166_v53 }
 0x19e   :  { %v167_v57 = vsub.f32 %v4129_v48, %v165_v55  ;;  %v170_v58 = vsel %vm155_vm1, %v168_v56, 0.0 }
 0x19f   :  { %171 = vadd.xlane.f32.xlu1 %v170_v58 }
 0x1a0   :  { %v169_v59 = vmul.f32 %v167_v57, %v167_v57 }
 0x1a2   :  { %v173_v60 = vsel %vm159_vm2, %v169_v59, 0.0 }
 0x1a3   :  { %174 = vadd.xlane.f32.xlu1 %v173_v60 }
 0x22c   :  { %v172_v4 = vpop.xlane.xlu1 %171 }
 0x22d   :  { %v176_v5 = vmul.f32 0.03125, %v172_v4 }
 0x22f   :  { %v178_v6 = vadd.f32 1e-12, %v176_v5 }
 0x230   :  { %v175_v7 = vpop.xlane.xlu1 %174 }
 0x231   :  { %3824 = vrsqrt.f32 %v178_v6  ;;  %v177_v8 = vmul.f32 0.03125, %v175_v7 }
 0x233   :  { %v179_v9 = vadd.f32 1e-12, %v177_v8 }
 0x235   :  { %3826 = vrsqrt.f32 %v179_v9 }
 0x23b   :  { %v3825_v10 = vpop.eup %3824 }
 0x23c   :  { %v182_v12 = vmul.f32 %v3825_v10, %v166_v53 }
 0x23e   :  { %v188_v14 = vmul.f32 %v3021_v11, %v182_v12 }
 0x23f   :  { %v3827_v15 = vpop.eup %3826 }
 0x240   :  { %v183_v16 = vmul.f32 %v3827_v15, %v167_v57  ;;  %v194_v17 = vadd.f32 %v3022_v13, %v188_v14 }
 0x242   :  { %v189_v18 = vmul.f32 %v3021_v11, %v183_v16  ;;  %3277 = vmatprep.mubr.msk.f32.mxu1 %vm155_vm1, %v194_v17 }
 0x244   :  { %v195_v19 = vadd.f32 %v3022_v13, %v189_v18 }
 0x246   :  { %3278 = vmatmul.mubr.msk.f32.vlgmr.msra.gmra.mrb[0].mxu1 %vm155_vm1, %v195_v19 }
 0x319   :  { %v3279_v21 = vpop.f32.mrb[0].mxu1 }
 0x31a   :  { %v4160_v22 = vadd.f32 %v3279_v21, %v3023_v20  ;;  %v279_v23 = vpop.f32.mrb[1].mxu1 }
 0x31b   :  { %v4162_v24 = vadd.f32 %v3023_v20, %v279_v23 }
 0x31d   :  { %3284 = vmatprep.mubr.msk.f32.mxu1 %vm294_vm3, %v4162_v24  ;;  %v4168_v25 = vpack.i.bf16 %v4160_v22, %v4162_v24 }
 0x31f   :  { %3745 = vrot.lane.b32.xlu0 %v4168_v25, %s3943_s12 }
 0x323   :  { %3755 = vrot.lane.b32.xlu0 %v4168_v25, %s3944_s13 }
 0x327   :  { %495 = vrot.lane.b32.xlu0 %v4162_v24, %s3945_s14 }
 0x32b   :  { %497 = vrot.lane.b32.xlu0 %v4160_v22, %s3945_s14 }
 0x391   :  { %v3746_v26 = vpop.permute.xlu0 %3745 }
 0x392   :  { %v3748_v27 = vunpack.i.h.bf16 %v3746_v26  ;;  %v3747_v28 = vunpack.i.l.bf16 %v3746_v26 }
 0x394   :  { %v3547_v30 = vpack.c.bf16 %v3748_v27, %v3747_v28 }
 0x395   :  { %v3756_v55 = vpop.permute.xlu0 %3755 }
 0x396   :  { %3549 = vmatprep.subr.msk.bf16.mxu1 %vm4180_vm4, %v3547_v30  ;;  %v3758_v57 = vunpack.i.h.bf16 %v3756_v55  ;;  %v3757_v58 = vunpack.i.l.bf16 %v3756_v55 }
 0x397   :  { %3552 = vmatpush3.bf16.xpose.msk.msra.mxu1 %vm4180_vm4, %v3547_v30 }
 0x398   :  { %v3559_v63 = vpack.c.bf16 %v3758_v57, %v3757_v58 }
 0x399   :  { %v496_v5 = vpop.permute.xlu0 %495 }
 0x39d   :  { %v498_v6 = vpop.permute.xlu0 %497 }
 0x39e   :  { %3285 = vmatmul.mubr.msk.f32.vlgmr.msra.gmra.mrb[2].mxu1 %vm294_vm3, %v4160_v22 }
 0x471   :  { %v3286_v31 = vpop.f32.mrb[2].mxu1 }
 0x472   :  { %v369_v32 = vpop.f32.mrb[3].mxu1  ;;  %v379_v34 = vmul.f32 0.35355338, %v3286_v31 }
 0x473   :  { %v378_v35 = vmul.f32 0.35355338, %v369_v32 }
 0x474   :  { %v381_v39 = vadd.f32 %v379_v34, %v4198_v36 }
 0x475   :  { %v380_v37 = vadd.f32 %v378_v35, %v4193_v33 }
 0x476   :  { %v387_v40 = vsel %vm386_vm6, %v381_v39, -inf }
 0x477   :  { %v383_v38 = vsel %vm382_vm5, %v380_v37, -inf }
 0x478   :  { %384 = vmax.xlane.f32.xlu1 %v383_v38 }
 0x47c   :  { %388 = vmax.xlane.f32.xlu1 %v387_v40 }
 0x505   :  { %v385_v41 = vpop.xlane.xlu1 %384 }
 0x506   :  { %v390_v42 = vsub.f32 %v380_v37, %v385_v41 }
 0x508   :  { %v392_v46 = vmul.f32 1.442695, %v390_v42 }
 0x509   :  { %v389_v44 = vpop.xlane.xlu1 %388 }
 0x50a   :  { %v391_v45 = vsub.f32 %v381_v39, %v389_v44 }
 0x50c   :  { %v394_v47 = vmul.f32 1.442695, %v391_v45 }
 0x50e   :  { %3828 = vpow2.f32 %v394_v47 }
 0x50f   :  { %3830 = vpow2.f32 %v392_v46 }
 0x518   :  { %v3829_v49 = vpop.eup %3828 }
 0x519   :  { %v399_v50 = vsel %vm386_vm6, %v3829_v49, 0.0  ;;  %v3831_v51 = vpop.eup %3830 }
 0x51a   :  { %400 = vadd.xlane.f32.xlu1 %v399_v50  ;;  %v396_v52 = vsel %vm382_vm5, %v3831_v51, 0.0 }
 0x51e   :  { %397 = vadd.xlane.f32.xlu1 %v396_v52 }
 0x52f   :  { %3750 = vrot.lane.b32.xlu1 %v4168_v25, %s3946_s18 }
 0x5a7   :  { %v401_v53 = vpop.xlane.xlu1 %400 }
 0x5a8   :  { %3832 = vrcp.f32 %v401_v53 }
 0x5ab   :  { %v398_v54 = vpop.xlane.xlu1 %397 }
 0x5ac   :  { %3834 = vrcp.f32 %v398_v54 }
 0x5af   :  { %v3751_v56 = vpop.permute.xlu1 %3750 }
 0x5b0   :  { %v3753_v59 = vunpack.i.h.bf16 %v3751_v56  ;;  %v3752_v60 = vunpack.i.l.bf16 %v3751_v56 }
 0x5b2   :  { %v3553_v62 = vpack.c.bf16 %v3753_v59, %v3752_v60  ;;  %v3833_v0 = vpop.eup %3832 }
 0x5b3   :  { %v405_v4 = vmul.f32 %v3833_v0, %v3829_v49 }
 0x5b4   :  { %3555 = vmatprep.subr.msk.bf16.mxu1 %vm4208_vm9, %v3553_v62 }
 0x5b5   :  { %3558 = vmatpush3.bf16.msk.msra.mxu1 %vm4208_vm9, %v3553_v62 }
 0x5b6   :  { %v3835_v1 = vpop.eup %3834  ;;  %3561 = vmatprep.subr.msk.bf16.mxu1 %vm4180_vm4, %v3559_v63 }
 0x5b7   :  { %v403_v2 = vmul.f32 %v3835_v1, %v3831_v51 }
 0x5b9   :  { %3291 = vmatprep.mubr.msk.f32.mxu1 %vm382_vm5, %v403_v2 }
 0x5ba   :  { %3292 = vmatmul.mubr.msk.f32.vlgmr.msra.gmra.mrb[4].mxu1 %vm382_vm5, %v405_v4 }
 0x5bb   :  { %3298 = vmatprep.mubr.msk.f32.mxu1 %vm294_vm3, %v496_v5 }
 0x5be   :  { %3564 = vmatpush3.bf16.xpose.msk.msra.mxu1 %vm4180_vm4, %v3559_v63 }
 0x5c5   :  { %3299 = vmatmul.mubr.msk.f32.vlgmr.msra.gmra.mrb[6].mxu1 %vm294_vm3, %v498_v6 }
 0x68d   :  { %v4224_v7 = vpop.f32.mrb[4].mxu1 }
 0x68e   :  { %v4226_v8 = vpop.f32.mrb[5].mxu1 }
 0x698   :  { %v3300_v9 = vpop.f32.mrb[6].mxu1 }
 0x699   :  { %v587_v10 = vmul.f32 0.35355338, %v3300_v9  ;;  %v577_v11 = vpop.f32.mrb[7].mxu1 }
 0x69a   :  { %v586_v12 = vmul.f32 0.35355338, %v577_v11 }
 0x69b   :  { %v589_v13 = vadd.f32 %v587_v10, %v4198_v36 }
 0x69c   :  { %v588_v14 = vadd.f32 %v586_v12, %v4193_v33 }
 0x69d   :  { %v593_v15 = vsel %vm386_vm6, %v589_v13, -inf }
 0x69e   :  { %594 = vmax.xlane.f32.xlu0 %v593_v15  ;;  %v590_v16 = vsel %vm382_vm5, %v588_v14, -inf }
 0x69f   :  { %591 = vmax.xlane.f32.xlu1 %v590_v16 }
 0x6b0   :  { %3760 = vrot.lane.b32.xlu1 %v4168_v25, %s3948_s0 }
 0x6b4   :  { %700 = vrot.lane.b32.xlu1 %v4162_v24, %s3949_s1 }
 0x6b8   :  { %702 = vrot.lane.b32.xlu1 %v4160_v22, %s3949_s1 }
 0x72b   :  { %v595_v17 = vpop.xlane.xlu0 %594 }
 0x72c   :  { %v597_v18 = vsub.f32 %v589_v13, %v595_v17  ;;  %v592_v19 = vpop.xlane.xlu1 %591 }
 0x72d   :  { %v596_v20 = vsub.f32 %v588_v14, %v592_v19 }
 0x72e   :  { %v600_v21 = vmul.f32 1.442695, %v597_v18 }
 0x72f   :  { %v598_v23 = vmul.f32 1.442695, %v596_v20 }
 0x730   :  { %3836 = vpow2.f32 %v600_v21  ;;  %v3761_v26 = vpop.permute.xlu1 %3760 }
 0x731   :  { %v3763_v27 = vunpack.i.h.bf16 %v3761_v26  ;;  %v3762_v28 = vunpack.i.l.bf16 %v3761_v26  ;;  %3838 = vpow2.f32 %v598_v23 }
 0x733   :  { %v3565_v30 = vpack.c.bf16 %v3763_v27, %v3762_v28 }
 0x734   :  { %v701_v49 = vpop.permute.xlu1 %700 }
 0x735   :  { %3567 = vmatprep.subr.msk.bf16.mxu1 %vm4208_vm9, %v3565_v30 }
 0x736   :  { %3570 = vmatpush3.bf16.msk.msra.mxu1 %vm4208_vm9, %v3565_v30 }
 0x738   :  { %v703_v50 = vpop.permute.xlu1 %702 }
 0x73a   :  { %v3837_v31 = vpop.eup %3836 }
 0x73b   :  { %v605_v32 = vsel %vm386_vm6, %v3837_v31, 0.0  ;;  %v3839_v34 = vpop.eup %3838 }
 0x73c   :  { %606 = vadd.xlane.f32.xlu0 %v605_v32  ;;  %v602_v35 = vsel %vm382_vm5, %v3839_v34, 0.0 }
 0x740   :  { %603 = vadd.xlane.f32.xlu0 %v602_v35 }
 0x756   :  { %3765 = vrot.lane.b32.xlu0 %v4168_v25, %s3950_s19 }
 0x7c9   :  { %v607_v37 = vpop.xlane.xlu0 %606 }
 0x7ca   :  { %3840 = vrcp.f32 %v607_v37 }
 0x7cd   :  { %v604_v38 = vpop.xlane.xlu0 %603 }
 0x7ce   :  { %3842 = vrcp.f32 %v604_v38 }
 0x7d1   :  { %v3766_v39 = vpop.permute.xlu0 %3765 }
 0x7d2   :  { %v3768_v40 = vunpack.i.h.bf16 %v3766_v39  ;;  %v3767_v41 = vunpack.i.l.bf16 %v3766_v39 }
 0x7d4   :  { %v3571_v42 = vpack.c.bf16 %v3768_v40, %v3767_v41  ;;  %v3841_v44 = vpop.eup %3840 }
 0x7d5   :  { %v611_v47 = vmul.f32 %v3841_v44, %v3837_v31 }
 0x7d6   :  { %3573 = vmatprep.subr.msk.bf16.mxu1 %vm4180_vm4, %v3571_v42 }
 0x7d8   :  { %v3843_v45 = vpop.eup %3842 }
 0x7d9   :  { %v609_v46 = vmul.f32 %v3843_v45, %v3839_v34 }
 0x7db   :  { %3305 = vmatprep.mubr.msk.f32.mxu1 %vm382_vm5, %v609_v46 }
 0x7dc   :  { %3306 = vmatmul.mubr.msk.f32.vlgmr.msra.gmra.mrb[8].mxu1 %vm382_vm5, %v611_v47 }
 0x7dd   :  { %3576 = vmatpush3.bf16.xpose.msk.msra.mxu1 %vm4180_vm4, %v3571_v42  ;;  %3312 = vmatprep.mubr.msk.f32.mxu1 %vm294_vm3, %v701_v49 }
 0x7e4   :  { %3313 = vmatmul.mubr.msk.f32.vlgmr.msra.gmra.mrb[10].mxu1 %vm294_vm3, %v703_v50 }
 0x8af   :  { %v4254_v51 = vpop.f32.mrb[8].mxu1 }
 0x8b0   :  { %v4256_v52 = vpop.f32.mrb[9].mxu1 }
 0x8b7   :  { %v3314_v53 = vpop.f32.mrb[10].mxu1 }
 0x8b8   :  { %v792_v54 = vmul.f32 0.35355338, %v3314_v53  ;;  %v782_v55 = vpop.f32.mrb[11].mxu1 }
 0x8b9   :  { %v791_v56 = vmul.f32 0.35355338, %v782_v55 }
 0x8ba   :  { %v794_v57 = vadd.f32 %v792_v54, %v4198_v36 }
 0x8bb   :  { %v793_v58 = vadd.f32 %v791_v56, %v4193_v33 }
 0x8bc   :  { %v798_v59 = vsel %vm386_vm6, %v794_v57, -inf }
 0x8bd   :  { %799 = vmax.xlane.f32.xlu0 %v798_v59  ;;  %v795_v60 = vsel %vm382_vm5, %v793_v58, -inf }
 0x8be   :  { %796 = vmax.xlane.f32.xlu1 %v795_v60 }
 0x8cf   :  { %3770 = vrot.lane.b32.xlu1 %v4168_v25, %s3951_s20 }
 0x8d3   :  { %905 = vrot.lane.b32.xlu1 %v4162_v24, %s3952_s21 }
 0x8d7   :  { %907 = vrot.lane.b32.xlu1 %v4160_v22, %s3952_s21 }
 0x94a   :  { %v800_v62 = vpop.xlane.xlu0 %799 }
 0x94b   :  { %v802_v63 = vsub.f32 %v794_v57, %v800_v62  ;;  %v797_v0 = vpop.xlane.xlu1 %796 }
 0x94c   :  { %v801_v1 = vsub.f32 %v793_v58, %v797_v0  ;;  %v1142_v0 = vld [vmem:[%s4706_s6] sm:$0xff] }
 0x94d   :  { %v805_v2 = vmul.f32 1.442695, %v802_v63 }
 0x94e   :  { %v803_v4 = vmul.f32 1.442695, %v801_v1  ;;  %v1144_v1 = vld [vmem:[%s4706_s6 + $0x10] sm:$0xff] }
 0x94f   :  { %3844 = vpow2.f32 %v805_v2  ;;  %v3771_v5 = vpop.permute.xlu1 %3770 }
 0x950   :  { %v3773_v6 = vunpack.i.h.bf16 %v3771_v5  ;;  %v3772_v9 = vunpack.i.l.bf16 %v3771_v5  ;;  %3846 = vpow2.f32 %v803_v4  ;;  %v1145_v4 = vld [vmem:[%s4706_s6 + $0x18] sm:$0xff] }
 0x951   :  { %v3599_v5 = vpack.c.bf16 %v1145_v4, %v1144_v1  ;;  %v1386_v1 = vld [vmem:[%s4709_s9] sm:$0xff] }
 0x952   :  { %v3577_v10 = vpack.c.bf16 %v3773_v6, %v3772_v9 }
 0x953   :  { %v906_v26 = vpop.permute.xlu1 %905 }
 0x954   :  { %3579 = vmatprep.subr.msk.bf16.mxu1 %vm4208_vm9, %v3577_v10 }
 0x955   :  { %3582 = vmatpush3.bf16.msk.msra.mxu1 %vm4208_vm9, %v3577_v10 }
 0x957   :  { %v908_v27 = vpop.permute.xlu1 %907 }
 0x959   :  { %v3845_v24 = vpop.eup %3844 }
 0x95a   :  { %v810_v22 = vsel %vm386_vm6, %v3845_v24, 0.0  ;;  %v3847_v11 = vpop.eup %3846 }
 0x95b   :  { %811 = vadd.xlane.f32.xlu0 %v810_v22  ;;  %v807_v12 = vsel %vm382_vm5, %v3847_v11, 0.0 }
 0x95f   :  { %808 = vadd.xlane.f32.xlu0 %v807_v12 }
 0x975   :  { %3775 = vrot.lane.b32.xlu0 %v4168_v25, %s3953_s22 }
 0x9e8   :  { %v812_v13 = vpop.xlane.xlu0 %811 }
 0x9e9   :  { %3848 = vrcp.f32 %v812_v13 }
 0x9ec   :  { %v809_v14 = vpop.xlane.xlu0 %808 }
 0x9ed   :  { %3850 = vrcp.f32 %v809_v14 }
 0x9f0   :  { %v3776_v15 = vpop.permute.xlu0 %3775 }
 0x9f1   :  { %v3778_v16 = vunpack.i.h.bf16 %v3776_v15  ;;  %v3777_v17 = vunpack.i.l.bf16 %v3776_v15 }
 0x9f3   :  { %v3583_v18 = vpack.c.bf16 %v3778_v16, %v3777_v17  ;;  %v3849_v19 = vpop.eup %3848 }
 0x9f4   :  { %v816_v23 = vmul.f32 %v3849_v19, %v3845_v24 }
 0x9f5   :  { %3585 = vmatprep.subr.msk.bf16.mxu1 %vm4180_vm4, %v3583_v18 }
 0x9f7   :  { %v3851_v20 = vpop.eup %3850 }
 0x9f8   :  { %v814_v21 = vmul.f32 %v3851_v20, %v3847_v11  ;;  %v3056_v20 = vld [vmem:[%s4710_s10 + $0x2] ss:$0 sm:$0xff] }
 0x9fa   :  { %3319 = vmatprep.mubr.msk.f32.mxu1 %vm382_vm5, %v814_v21 }
 0x9fb   :  { %3320 = vmatmul.mubr.msk.f32.vlgmr.msra.gmra.mrb[12].mxu1 %vm382_vm5, %v816_v23 }
 0x9fc   :  { %3588 = vmatpush3.bf16.xpose.msk.msra.mxu1 %vm4180_vm4, %v3583_v18  ;;  %3326 = vmatprep.mubr.msk.f32.mxu1 %vm294_vm3, %v906_v26 }
 0xa03   :  { %3327 = vmatmul.mubr.msk.f32.vlgmr.msra.gmra.mrb[14].mxu1 %vm294_vm3, %v908_v27 }
 0xace   :  { %v3321_v28 = vpop.f32.mrb[12].mxu1 }
 0xacf   :  { %v896_v30 = vpop.f32.mrb[13].mxu1 }
 0xad6   :  { %v3328_v31 = vpop.f32.mrb[14].mxu1 }
 0xad7   :  { %v997_v32 = vmul.f32 0.35355338, %v3328_v31  ;;  %v987_v34 = vpop.f32.mrb[15].mxu1 }
 0xad8   :  { %v996_v35 = vmul.f32 0.35355338, %v987_v34 }
 0xad9   :  { %v999_v37 = vadd.f32 %v997_v32, %v4198_v36 }
 0xada   :  { %v998_v38 = vadd.f32 %v996_v35, %v4193_v33 }
 0xadb   :  { %v1003_v39 = vsel %vm386_vm6, %v999_v37, -inf }
 0xadc   :  { %1004 = vmax.xlane.f32.xlu0 %v1003_v39  ;;  %v1000_v40 = vsel %vm382_vm5, %v998_v38, -inf }
 0xadd   :  { %1001 = vmax.xlane.f32.xlu1 %v1000_v40 }
 0xaee   :  { %3780 = vrot.lane.b32.xlu1 %v4168_v25, %s3954_s23 }
 0xaf2   :  { %1114 = vrot.lane.b32.xlu1 %v4254_v51, %s3955_s24 }
 0xaf6   :  { %1120 = vrot.lane.b32.xlu1 %v896_v30, %s4714_s25 }
 0xafa   :  { %1122 = vrot.lane.b32.xlu1 %v3321_v28, %s4714_s25 }
 0xb69   :  { %v1005_v41 = vpop.xlane.xlu0 %1004 }
 0xb6a   :  { %v1007_v42 = vsub.f32 %v999_v37, %v1005_v41  ;;  %v1002_v44 = vpop.xlane.xlu1 %1001  ;;  %v1276_v41 = vld [vmem:[%s4707_s7] sm:$0xff] }
 0xb6b   :  { %v1006_v45 = vsub.f32 %v998_v38, %v1002_v44 }
 0xb6c   :  { %v1010_v46 = vmul.f32 1.442695, %v1007_v42  ;;  %v1277_v42 = vld [vmem:[%s4707_s7 + $0x8] sm:$0xff] }
 0xb6d   :  { %v1008_v47 = vmul.f32 1.442695, %v1006_v45  ;;  %v3603_v44 = vpack.c.bf16 %v1277_v42, %v1276_v41  ;;  %v1278_v45 = vld [vmem:[%s4707_s7 + $0x10] sm:$0xff]  ;;  %v3064_v42 = vld [vmem:[%s4710_s10 + $0x5] ss:$0 sm:$0xff] }
 0xb6e   :  { %v3781_v49 = vpop.permute.xlu1 %3780 }
 0xb6f   :  { %3852 = vpow2.f32 %v1008_v47  ;;  %v3783_v50 = vunpack.i.h.bf16 %v3781_v49  ;;  %v3782_v53 = vunpack.i.l.bf16 %v3781_v49 }
 0xb70   :  { %3854 = vpow2.f32 %v1010_v46  ;;  %v1279_v46 = vld [vmem:[%s4707_s7 + $0x18] sm:$0xff] }
 0xb71   :  { %v3589_v25 = vpack.c.bf16 %v3783_v50, %v3782_v53  ;;  %v3607_v47 = vpack.c.bf16 %v1279_v46, %v1278_v45 }
 0xb72   :  { %v1115_v10 = vpop.permute.xlu1 %1114 }
 0xb73   :  { %3591 = vmatprep.subr.msk.bf16.mxu0 %vm4208_vm9, %v3589_v25  ;;  %v1135_v14 = vsel %vm294_vm3, %v4224_v7, %v1115_v10 }
 0xb74   :  { %3594 = vmatpush3.bf16.msk.msra.mxu0 %vm4208_vm9, %v3589_v25 }
 0xb75   :  { %3604 = vmatprep.subr.bf16.mxu0 %v3603_v44 }
 0xb76   :  { %v1121_v24 = vpop.permute.xlu1 %1120 }
 0xb79   :  { %v3853_v51 = vpop.eup %3852 }
 0xb7a   :  { %v1012_v54 = vsel %vm382_vm5, %v3853_v51, 0.0  ;;  %v3855_v55 = vpop.eup %3854  ;;  %v1123_v11 = vpop.permute.xlu1 %1122 }
 0xb7b   :  { %1013 = vadd.xlane.f32.xlu0 %v1012_v54  ;;  %v1015_v56 = vsel %vm386_vm6, %v3855_v55, 0.0  ;;  %v1138_v17 = vsel %vm1136_vm10, %v1135_v14, %v1123_v11  ;;  %v1392_v11 = vld [vmem:[%s4709_s9 + $0x30] sm:$0xff]  ;;  %v3059_v14 = vld [vmem:[%s4708_s8] ss:$0 sm:$0xff] }
 0xb7f   :  { %1016 = vadd.xlane.f32.xlu0 %v1015_v56  ;;  %v3057_v56 = vld [vmem:[%s4710_s10 + $0x3] ss:$0 sm:$0xff] }
 0xb95   :  { %1112 = vrot.lane.b32.xlu0 %v4256_v52, %s3955_s24  ;;  %v1143_v52 = vld [vmem:[%s4706_s6 + $0x8] sm:$0xff] }
 0xb96   :  { %v3595_v2 = vpack.c.bf16 %v1143_v52, %v1142_v0 }
 0xb98   :  { %3596 = vmatprep.subr.bf16.mxu1 %v3595_v2 }
 0xb99   :  { %3598 = vmatpush3.bf16.msra.mxu1 %v3595_v2  ;;  %v1387_v2 = vld [vmem:[%s4709_s9 + $0x8] sm:$0xff] }
 0xb9a   :  { %3600 = vmatprep.subr.bf16.mxu1 %v3599_v5  ;;  %v3611_v4 = vpack.c.bf16 %v1387_v2, %v1386_v1 }
 0xb9d   :  { %3602 = vmatpush3.bf16.msra.mxu1 %v3599_v5  ;;  %v1388_v5 = vld [vmem:[%s4709_s9 + $0x10] sm:$0xff] }
 0xb9e   :  { %3612 = vmatprep.subr.bf16.mxu1 %v3611_v4 }
 0xc08   :  { %v1014_v57 = vpop.xlane.xlu0 %1013 }
 0xc09   :  { %3856 = vrcp.f32 %v1014_v57 }
 0xc0c   :  { %v1017_v58 = vpop.xlane.xlu0 %1016 }
 0xc0d   :  { %3858 = vrcp.f32 %v1017_v58  ;;  %v3058_v58 = vld [vmem:[%s4710_s10 + $0x4] ss:$0 sm:$0xff] }
 0xc10   :  { %v1113_v22 = vpop.permute.xlu0 %1112 }
 0xc11   :  { %v1134_v12 = vsel %vm294_vm3, %v4226_v8, %v1113_v22 }
 0xc12   :  { %v1137_v15 = vsel %vm1136_vm10, %v1134_v12, %v1121_v24  ;;  %v1391_v24 = vld [vmem:[%s4709_s9 + $0x28] sm:$0xff]  ;;  %v1393_v12 = vld [vmem:[%s4709_s9 + $0x38] sm:$0xff] }
 0xc13   :  { %v3857_v59 = vpop.eup %3856 }
 0xc14   :  { %v1019_v60 = vmul.f32 %v3857_v59, %v3853_v51 }
 0xc16   :  { %3333 = vmatprep.mubr.msk.f32.mxu0 %vm382_vm5, %v1019_v60 }
 0xc17   :  { %v3859_v62 = vpop.eup %3858 }
 0xc18   :  { %v1021_v63 = vmul.f32 %v3859_v62, %v3855_v55 }
 0xc1a   :  { %3334 = vmatmul.mubr.msk.f32.vlgmr.msra.gmra.mrb[4].mxu0 %vm382_vm5, %v1021_v63 }
 0xc1b   :  { %3606 = vmatpush3.bf16.msra.mxu0 %v3603_v44 }
 0xc1c   :  { %3608 = vmatprep.subr.bf16.mxu0 %v3607_v47 }
 0xc1f   :  { %3610 = vmatpush3.bf16.msra.mxu0 %v3607_v47 }
 0xced   :  { %v3335_v6 = vpop.f32.mrb[4].mxu0 }
 0xcee   :  { %1130 = vrot.lane.b32.xlu1 %v3335_v6, %s4712_s17  ;;  %v1101_v9 = vpop.f32.mrb[5].mxu0  ;;  %v1389_v6 = vld [vmem:[%s4709_s9 + $0x18] sm:$0xff] }
 0xcef   :  { %1128 = vrot.lane.b32.xlu0 %v1101_v9, %s4712_s17  ;;  %v1390_v9 = vld [vmem:[%s4709_s9 + $0x20] sm:$0xff]  ;;  %v3615_v10 = vpack.c.bf16 %v1389_v6, %v1388_v5 }
 0xcf0   :  { %v3619_v22 = vpack.c.bf16 %v1391_v24, %v1390_v9 }
 0xd60   :  { %v1131_v13 = vpop.permute.xlu1 %1130 }
 0xd61   :  { %v1129_v16 = vpop.permute.xlu0 %1128  ;;  %v1141_v19 = vsel %vm1139_vm11, %v1138_v17, %v1131_v13  ;;  %v3623_v13 = vpack.c.bf16 %v1393_v12, %v1392_v11 }
 0xd62   :  { %v1140_v18 = vsel %vm1139_vm11, %v1137_v15, %v1129_v16 }
 0xd63   :  { %3344 = vmatprep.mubr.msk.f32.mxu1 %vm155_vm1, %v1140_v18 }
 0xd64   :  { %3345 = vmatmul.mubr.msk.f32.vlgmr.msra.gmra.mrb[16].mxu1 %vm155_vm1, %v1141_v19 }
 0xd65   :  { %3614 = vmatpush3.bf16.msra.mxu1 %v3611_v4 }
 0xd66   :  { %3616 = vmatprep.subr.bf16.mxu1 %v3615_v10 }
 0xd69   :  { %3618 = vmatpush3.bf16.msra.mxu1 %v3615_v10 }
 0xd6a   :  { %3620 = vmatprep.subr.bf16.mxu1 %v3619_v22 }
 0xd6d   :  { %3622 = vmatpush3.bf16.msra.mxu1 %v3619_v22  ;;  %v3065_v22 = vld [vmem:[%s4710_s10 + $0x6] ss:$0 sm:$0xff] }
 0xd6e   :  { %3624 = vmatprep.subr.bf16.mxu1 %v3623_v13 }
 0xd71   :  { %3626 = vmatpush3.bf16.msra.mxu1 %v3623_v13 }
 0xe37   :  { %v3346_v8 = vpop.f32.mrb[16].mxu1 }
 0xe38   :  { %v1228_v7 = vadd.f32 %v3346_v8, %v4129_v48  ;;  %v1218_v21 = vpop.f32.mrb[17].mxu1 }
 0xe39   :  { %v1227_v23 = vadd.f32 %v1218_v21, %v4122_v43 }
 0xe3a   :  { %v4333_v26 = vadd.f32 %v3056_v20, %v1228_v7 }
 0xe3b   :  { %v4335_v27 = vadd.f32 %v3056_v20, %v1227_v23 }
 0xe3c   :  { %v1241_v28 = vsel %vm159_vm2, %v4333_v26, 0.0 }
 0xe3d   :  { %1242 = vadd.xlane.f32.xlu1 %v1241_v28  ;;  %v1238_v30 = vsel %vm155_vm1, %v4335_v27, 0.0 }
 0xe3e   :  { %1239 = vadd.xlane.f32.xlu0 %v1238_v30 }
 0xeca   :  { %v1243_v31 = vpop.xlane.xlu1 %1242 }
 0xecb   :  { %v1245_v32 = vmul.f32 0.03125, %v1243_v31  ;;  %v1240_v34 = vpop.xlane.xlu0 %1239 }
 0xecc   :  { %v1244_v35 = vmul.f32 0.03125, %v1240_v34 }
 0xecd   :  { %v1247_v48 = vsub.f32 %v4333_v26, %v1245_v32 }
 0xece   :  { %v1246_v43 = vsub.f32 %v4335_v27, %v1244_v35 }
 0xecf   :  { %v1249_v39 = vmul.f32 %v1247_v48, %v1247_v48 }
 0xed0   :  { %v1248_v37 = vmul.f32 %v1246_v43, %v1246_v43 }
 0xed1   :  { %v1253_v40 = vsel %vm159_vm2, %v1249_v39, 0.0 }
 0xed2   :  { %v1250_v38 = vsel %vm155_vm1, %v1248_v37, 0.0 }
 0xed3   :  { %1251 = vadd.xlane.f32.xlu0 %v1250_v38 }
 0xed7   :  { %1254 = vadd.xlane.f32.xlu0 %v1253_v40 }
 0xf60   :  { %v1252_v49 = vpop.xlane.xlu0 %1251 }
 0xf61   :  { %v1256_v50 = vmul.f32 0.03125, %v1252_v49 }
 0xf63   :  { %v1258_v53 = vadd.f32 1e-12, %v1256_v50 }
 0xf64   :  { %v1255_v25 = vpop.xlane.xlu0 %1254 }
 0xf65   :  { %3860 = vrsqrt.f32 %v1258_v53  ;;  %v1257_v51 = vmul.f32 0.03125, %v1255_v25 }
 0xf67   :  { %v1259_v54 = vadd.f32 1e-12, %v1257_v51 }
 0xf69   :  { %3862 = vrsqrt.f32 %v1259_v54 }
 0xf6f   :  { %v3861_v55 = vpop.eup %3860 }
 0xf70   :  { %v1262_v57 = vmul.f32 %v3861_v55, %v1246_v43 }
 0xf72   :  { %v1268_v59 = vmul.f32 %v3057_v56, %v1262_v57 }
 0xf73   :  { %v3863_v60 = vpop.eup %3862 }
 0xf74   :  { %v1263_v62 = vmul.f32 %v3863_v60, %v1247_v48  ;;  %v1274_v63 = vadd.f32 %v3058_v58, %v1268_v59  ;;  %v3067_v60 = vld [vmem:[%s4704_s4 + $0x20] sm:$0xff] }
 0xf76   :  { %v1269_v0 = vmul.f32 %v3057_v56, %v1263_v62  ;;  %3355 = vmatprep.mubr.msk.f32.mxu0 %vm155_vm1, %v1274_v63  ;;  %v3068_v62 = vld [vmem:[%s4704_s4 + $0x28] sm:$0xff] }
 0xf77   :  { %v3627_v63 = vpack.c.bf16 %v3068_v62, %v3067_v60 }
 0xf78   :  { %v1275_v52 = vadd.f32 %v3058_v58, %v1269_v0  ;;  %v3069_v0 = vld [vmem:[%s4704_s4 + $0x30] sm:$0xff] }
 0xf79   :  { %3628 = vmatprep.subr.bf16.mxu0 %v3627_v63 }
 0xf7a   :  { %3356 = vmatmul.mubr.msk.f32.vlgmr.msra.gmra.mrb[6].mxu0 %vm155_vm1, %v1275_v52  ;;  %v3070_v52 = vld [vmem:[%s4704_s4 + $0x38] sm:$0xff] }
 0xf7b   :  { %3630 = vmatpush3.bf16.msra.mxu0 %v3627_v63  ;;  %v3631_v1 = vpack.c.bf16 %v3070_v52, %v3069_v0 }
 0xf7d   :  { %3632 = vmatprep.subr.bf16.mxu0 %v3631_v1 }
 0xf7f   :  { %3634 = vmatpush3.bf16.msra.mxu0 %v3631_v1 }
0x104d   :  { %v3357_v15 = vpop.f32.mrb[6].mxu0 }
0x104e   :  { %v1365_v16 = vadd.f32 %v3357_v15, %v3059_v14  ;;  %v1359_v17 = vpop.f32.mrb[7].mxu0 }
0x104f   :  { %v1360_v18 = vadd.f32 %v3059_v14, %v1359_v17  ;;  %v3066_v14 = vld [vmem:[%s4710_s10 + $0x7] ss:$0 sm:$0xff] }
0x1050   :  { %v1371_v19 = vmul.f32 0.044715, %v1365_v16  ;;  %v1369_v38 = vmul.f32 0.5, %v1365_v16 }
0x1051   :  { %v1370_v8 = vmul.f32 0.044715, %v1360_v18  ;;  %v1368_v43 = vmul.f32 0.5, %v1360_v18 }
0x1052   :  { %v1373_v20 = vmul.f32 %v1371_v19, %v1365_v16  ;;  %v3072_v19 = vld [vmem:[%s4705_s5 + $0x1] ss:$0 sm:$0xff] }
0x1053   :  { %v1372_v7 = vmul.f32 %v1370_v8, %v1360_v18 }
0x1054   :  { %v1375_v21 = vmul.f32 %v1373_v20, %v1365_v16 }
0x1055   :  { %v1374_v23 = vmul.f32 %v1372_v7, %v1360_v18 }
0x1056   :  { %v1377_v28 = vadd.f32 %v1375_v21, %v1365_v16 }
0x1057   :  { %v1376_v30 = vadd.f32 %v1374_v23, %v1360_v18 }
0x1058   :  { %v1379_v31 = vmul.f32 0.7978846, %v1377_v28 }
0x1059   :  { %v1378_v32 = vmul.f32 0.7978846, %v1376_v30 }
0x105a   :  { %3864 = vtanh.f32 %v1379_v31 }
0x105b   :  { %3866 = vtanh.f32 %v1378_v32 }
0x1064   :  { %v3865_v34 = vpop.eup %3864 }
0x1065   :  { %v3867_v35 = vpop.eup %3866  ;;  %v1383_v48 = vadd.f32 1.0, %v3865_v34 }
0x1066   :  { %v1382_v37 = vadd.f32 1.0, %v3867_v35 }
0x1067   :  { %v1385_v40 = vmul.f32 %v1383_v48, %v1369_v38 }
0x1068   :  { %v1384_v39 = vmul.f32 %v1382_v37, %v1368_v43 }
0x106a   :  { %3374 = vmatprep.mubr.msk.f32.mxu1 %vm69_vm0, %v1384_v39 }
0x106b   :  { %3375 = vmatmul.mubr.msk.f32.vlgmr.msra.gmra.mrb[18].mxu1 %vm69_vm0, %v1385_v40 }
0x113e   :  { %v3376_v41 = vpop.f32.mrb[18].mxu1 }
0x113f   :  { %v1476_v44 = vadd.f32 %v3376_v41, %v4333_v26  ;;  %v1466_v45 = vpop.f32.mrb[19].mxu1 }
0x1140   :  { %v1475_v46 = vadd.f32 %v1466_v45, %v4335_v27 }
0x1141   :  { %v4399_v47 = vadd.f32 %v3064_v42, %v1476_v44 }
0x1142   :  { %v4401_v49 = vadd.f32 %v3064_v42, %v1475_v46 }
0x1143   :  { %v1489_v50 = vsel %vm159_vm2, %v4399_v47, 0.0 }
0x1144   :  { %1490 = vadd.xlane.f32.xlu1 %v1489_v50  ;;  %v1486_v53 = vsel %vm155_vm1, %v4401_v49, 0.0 }
0x1145   :  { %1487 = vadd.xlane.f32.xlu0 %v1486_v53 }
0x11d1   :  { %v1491_v25 = vpop.xlane.xlu1 %1490 }
0x11d2   :  { %v1493_v51 = vmul.f32 0.03125, %v1491_v25  ;;  %v1488_v54 = vpop.xlane.xlu0 %1487 }
0x11d3   :  { %v1492_v55 = vmul.f32 0.03125, %v1488_v54 }
0x11d4   :  { %v1495_v26 = vsub.f32 %v4399_v47, %v1493_v51 }
0x11d5   :  { %v1494_v27 = vsub.f32 %v4401_v49, %v1492_v55 }
0x11d6   :  { %v1497_v56 = vmul.f32 %v1495_v26, %v1495_v26 }
0x11d7   :  { %v1496_v57 = vmul.f32 %v1494_v27, %v1494_v27 }
0x11d8   :  { %v1501_v58 = vsel %vm159_vm2, %v1497_v56, 0.0 }
0x11d9   :  { %1502 = vadd.xlane.f32.xlu1 %v1501_v58  ;;  %v1498_v59 = vsel %vm155_vm1, %v1496_v57, 0.0 }
0x11da   :  { %1499 = vadd.xlane.f32.xlu0 %v1498_v59 }
0x1266   :  { %v1503_v2 = vpop.xlane.xlu1 %1502 }
0x1267   :  { %v1505_v4 = vmul.f32 0.03125, %v1503_v2  ;;  %v1500_v5 = vpop.xlane.xlu0 %1499 }
0x1268   :  { %v1504_v6 = vmul.f32 0.03125, %v1500_v5 }
0x1269   :  { %v1507_v9 = vadd.f32 1e-12, %v1505_v4 }
0x126a   :  { %v1506_v10 = vadd.f32 1e-12, %v1504_v6 }
0x126b   :  { %3868 = vrsqrt.f32 %v1507_v9 }
0x126c   :  { %3870 = vrsqrt.f32 %v1506_v10 }
0x1275   :  { %v3869_v24 = vpop.eup %3868 }
0x1276   :  { %v3871_v11 = vpop.eup %3870  ;;  %v1511_v12 = vmul.f32 %v3869_v24, %v1495_v26 }
0x1277   :  { %v1510_v13 = vmul.f32 %v3871_v11, %v1494_v27 }
0x1278   :  { %v1517_v15 = vmul.f32 %v3065_v22, %v1511_v12 }
0x1279   :  { %v1516_v16 = vmul.f32 %v3065_v22, %v1510_v13 }
0x127a   :  { %v1523_v18 = vadd.f32 %v3066_v14, %v1517_v15 }
0x127b   :  { %v1522_v17 = vadd.f32 %v3066_v14, %v1516_v16 }
0x127d   :  { %3385 = vmatprep.mubr.msk.f32.mxu0 %vm155_vm1, %v1522_v17 }
0x127e   :  { %3386 = vmatmul.mubr.msk.f32.vlgmr.msra.gmra.mrb[8].mxu0 %vm155_vm1, %v1523_v18 }
0x1351   :  { %v3387_v8 = vpop.f32.mrb[8].mxu0 }
0x1352   :  { %v4434_v20 = vadd.f32 %v3387_v8, %v3072_v19  ;;  %v1609_v7 = vpop.f32.mrb[9].mxu0 }
0x1353   :  { %v4436_v21 = vadd.f32 %v3072_v19, %v1609_v7 }
0x1355   :  { %3392 = vmatprep.mubr.msk.f32.mxu0 %vm294_vm3, %v4436_v21  ;;  %v4442_v23 = vpack.i.bf16 %v4434_v20, %v4436_v21 }
0x1357   :  { %3790 = vrot.lane.b32.xlu1 %v4442_v23, %s3944_s13  ;;  %3785 = vrot.lane.b32.xlu0 %v4442_v23, %s3943_s12 }
0x135b   :  { %1821 = vrot.lane.b32.xlu1 %v4436_v21, %s3945_s14 }
0x135f   :  { %1823 = vrot.lane.b32.xlu1 %v4434_v20, %s3945_s14 }
0x13c9   :  { %v3791_v28 = vpop.permute.xlu1 %3790  ;;  %v3786_v30 = vpop.permute.xlu0 %3785 }
0x13ca   :  { %v3793_v31 = vunpack.i.h.bf16 %v3791_v28  ;;  %v3792_v32 = vunpack.i.l.bf16 %v3791_v28  ;;  %v3788_v34 = vunpack.i.h.bf16 %v3786_v30  ;;  %v3787_v35 = vunpack.i.l.bf16 %v3786_v30 }
0x13cc   :  { %v3635_v48 = vpack.c.bf16 %v3788_v34, %v3787_v35  ;;  %v3647_v43 = vpack.c.bf16 %v3793_v31, %v3792_v32 }
0x13cd   :  { %v1822_v37 = vpop.permute.xlu1 %1821 }
0x13ce   :  { %3637 = vmatprep.subr.msk.bf16.mxu0 %vm4180_vm4, %v3635_v48 }
0x13cf   :  { %3640 = vmatpush3.bf16.xpose.msk.msra.mxu0 %vm4180_vm4, %v3635_v48 }
0x13d0   :  { %3649 = vmatprep.subr.msk.bf16.mxu0 %vm4180_vm4, %v3647_v43 }
0x13d1   :  { %v1824_v38 = vpop.permute.xlu1 %1823 }
0x13d6   :  { %3393 = vmatmul.mubr.msk.f32.vlgmr.msra.gmra.mrb[10].mxu0 %vm294_vm3, %v4434_v20 }
0x13d7   :  { %3652 = vmatpush3.bf16.xpose.msk.msra.mxu0 %vm4180_vm4, %v3647_v43  ;;  %3406 = vmatprep.mubr.msk.f32.mxu0 %vm294_vm3, %v1822_v37 }
0x13de   :  { %3407 = vmatmul.mubr.msk.f32.vlgmr.msra.gmra.mrb[12].mxu0 %vm294_vm3, %v1824_v38 }
0x14a9   :  { %v3394_v39 = vpop.f32.mrb[10].mxu0 }
0x14aa   :  { %v1708_v40 = vmul.f32 0.35355338, %v3394_v39  ;;  %v1698_v41 = vpop.f32.mrb[11].mxu0 }
0x14ab   :  { %v1707_v42 = vmul.f32 0.35355338, %v1698_v41 }
0x14ac   :  { %v1710_v44 = vadd.f32 %v1708_v40, %v4198_v36 }
0x14ad   :  { %v1709_v45 = vadd.f32 %v1707_v42, %v4193_v33 }
0x14ae   :  { %v1714_v46 = vsel %vm386_vm6, %v1710_v44, -inf }
0x14af   :  { %1715 = vmax.xlane.f32.xlu1 %v1714_v46  ;;  %v1711_v50 = vsel %vm382_vm5, %v1709_v45, -inf }
0x14b0   :  { %1712 = vmax.xlane.f32.xlu0 %v1711_v50 }
0x14b1   :  { %v3408_v53 = vpop.f32.mrb[12].mxu0 }
0x14b2   :  { %v1903_v25 = vpop.f32.mrb[13].mxu0  ;;  %v1913_v51 = vmul.f32 0.35355338, %v3408_v53 }
0x14b3   :  { %v1912_v54 = vmul.f32 0.35355338, %v1903_v25 }
0x14b4   :  { %v1915_v27 = vadd.f32 %v1913_v51, %v4198_v36 }
0x14b5   :  { %v1914_v55 = vadd.f32 %v1912_v54, %v4193_v33 }
0x14b6   :  { %v1919_v56 = vsel %vm386_vm6, %v1915_v27, -inf }
0x14b7   :  { %v1916_v26 = vsel %vm382_vm5, %v1914_v55, -inf }
0x14b8   :  { %1917 = vmax.xlane.f32.xlu0 %v1916_v26 }
0x14bc   :  { %1920 = vmax.xlane.f32.xlu0 %v1919_v56 }
0x153c   :  { %v1716_v57 = vpop.xlane.xlu1 %1715 }
0x153d   :  { %v1718_v58 = vsub.f32 %v1710_v44, %v1716_v57  ;;  %v1713_v59 = vpop.xlane.xlu0 %1712  ;;  %v3917_v57 = vld [vmem:[%s4702_s2] sm:$0xff] }
0x153e   :  { %v1717_v60 = vsub.f32 %v1709_v45, %v1713_v59 }
0x153f   :  { %v1721_v62 = vmul.f32 1.442695, %v1718_v58 }
0x1540   :  { %v1719_v63 = vmul.f32 1.442695, %v1717_v60 }
0x1541   :  { %3872 = vpow2.f32 %v1721_v62 }
0x1542   :  { %3874 = vpow2.f32 %v1719_v63 }
0x1545   :  { %v1918_v0 = vpop.xlane.xlu0 %1917 }
0x1546   :  { %v1922_v52 = vsub.f32 %v1914_v55, %v1918_v0 }
0x1548   :  { %v1924_v1 = vmul.f32 1.442695, %v1922_v52 }
0x1549   :  { %v1921_v33 = vpop.xlane.xlu0 %1920 }
0x154a   :  { %3876 = vpow2.f32 %v1924_v1  ;;  %v1923_v2 = vsub.f32 %v1915_v27, %v1921_v33  ;;  %v3916_v27 = vld [vmem:[%s4702_s2 + $0x8] sm:$0x3]  ;;  %s4720_s2 = smov 16  }
0x154b   :  { %v3873_v4 = vpop.eup %3872 }
0x154c   :  { %v3875_v36 = vpop.eup %3874  ;;  %v1926_v5 = vmul.f32 1.442695, %v1923_v2  ;;  %v1726_v6 = vsel %vm386_vm6, %v3873_v4, 0.0 }
0x154d   :  { %1727 = vadd.xlane.f32.xlu1 %v1726_v6  ;;  %v1723_v9 = vsel %vm382_vm5, %v3875_v36, 0.0 }
0x154e   :  { %3878 = vpow2.f32 %v1926_v5  ;;  %1724 = vadd.xlane.f32.xlu0 %v1723_v9 }
0x1554   :  { %v3877_v10 = vpop.eup %3876 }
0x1555   :  { %v1928_v24 = vsel %vm382_vm5, %v3877_v10, 0.0 }
0x1556   :  { %1929 = vadd.xlane.f32.xlu0 %v1928_v24 }
0x1558   :  { %v3879_v22 = vpop.eup %3878 }
0x1559   :  { %v1931_v11 = vsel %vm386_vm6, %v3879_v22, 0.0 }
0x155a   :  { %1932 = vadd.xlane.f32.xlu1 %v1931_v11 }
0x156b   :  { %3800 = vrot.lane.b32.xlu1 %v4442_v23, %s3948_s0 }
0x156c   :  { %3795 = vrot.lane.b32.xlu0 %v4442_v23, %s3946_s18 }
0x156f   :  { %3805 = vrot.lane.b32.xlu1 %v4442_v23, %s3950_s19 }
0x1570   :  { %2028 = vrot.lane.b32.xlu0 %v4434_v20, %s3949_s1 }
0x1573   :  { %2026 = vrot.lane.b32.xlu1 %v4436_v21, %s3949_s1  ;;  %s3960_s1 = smov [#allocation2]  }
0x1574   :  { %s3011_s19 = sshll.u32 %s3960_s1, 4  ;;  %s3012_s19 = int_to_ptr.vmem [resolvable:$true] %s3011_s19 }
0x1575   :  { %p3923_p1 = scmp.lt.s32.totalorder %s3012_s19, %s3012_s19 }
0x15da   :  { %v1728_v13 = vpop.xlane.xlu1 %1727 }
0x15db   :  { %v1725_v12 = vpop.xlane.xlu0 %1724 }
0x15dc   :  { %3880 = vrcp.f32 %v1725_v12 }
0x15dd   :  { %3882 = vrcp.f32 %v1728_v13 }
0x15e3   :  { %v1930_v14 = vpop.xlane.xlu0 %1929 }
0x15e4   :  { %3884 = vrcp.f32 %v1930_v14 }
0x15e6   :  { %v3881_v15 = vpop.eup %3880 }
0x15e7   :  { %v1933_v16 = vpop.xlane.xlu1 %1932  ;;  %v3796_v17 = vpop.permute.xlu0 %3795  ;;  %v1730_v18 = vmul.f32 %v3881_v15, %v3875_v36 }
0x15e8   :  { %3886 = vrcp.f32 %v1933_v16  ;;  %v3798_v19 = vunpack.i.h.bf16 %v3796_v17  ;;  %v3797_v8 = vunpack.i.l.bf16 %v3796_v17  ;;  %v3883_v28 = vpop.eup %3882 }
0x15e9   :  { %3399 = vmatprep.mubr.msk.f32.mxu1 %vm382_vm5, %v1730_v18  ;;  %v1732_v35 = vmul.f32 %v3883_v28, %v3873_v4 }
0x15ea   :  { %v3641_v7 = vpack.c.bf16 %v3798_v19, %v3797_v8 }
0x15eb   :  { %v3801_v30 = vpop.permute.xlu1 %3800  ;;  %v2029_v45 = vpop.permute.xlu0 %2028 }
0x15ec   :  { %v3803_v31 = vunpack.i.h.bf16 %v3801_v30  ;;  %v3802_v32 = vunpack.i.l.bf16 %v3801_v30  ;;  %3643 = vmatprep.subr.msk.bf16.mxu1 %vm4208_vm9, %v3641_v7 }
0x15ed   :  { %3646 = vmatpush3.bf16.msk.msra.mxu1 %vm4208_vm9, %v3641_v7 }
0x15ee   :  { %v3885_v34 = vpop.eup %3884  ;;  %v3653_v48 = vpack.c.bf16 %v3803_v31, %v3802_v32 }
0x15ef   :  { %v3806_v43 = vpop.permute.xlu1 %3805  ;;  %v1935_v37 = vmul.f32 %v3885_v34, %v3877_v10 }
0x15f0   :  { %v3808_v38 = vunpack.i.h.bf16 %v3806_v43  ;;  %v3807_v39 = vunpack.i.l.bf16 %v3806_v43  ;;  %3400 = vmatmul.mubr.msk.f32.vlgmr.msra.gmra.mrb[20].mxu1 %vm382_vm5, %v1732_v35  ;;  %3655 = vmatprep.subr.msk.bf16.mxu1 %vm4208_vm9, %v3653_v48 }
0x15f1   :  { %3658 = vmatpush3.bf16.msk.msra.mxu1 %vm4208_vm9, %v3653_v48  ;;  %3413 = vmatprep.mubr.msk.f32.mxu1 %vm382_vm5, %v1935_v37 }
0x15f2   :  { %v3887_v40 = vpop.eup %3886  ;;  %v3659_v41 = vpack.c.bf16 %v3808_v38, %v3807_v39 }
0x15f3   :  { %v1937_v42 = vmul.f32 %v3887_v40, %v3879_v22  ;;  %v2027_v44 = vpop.permute.xlu1 %2026 }
0x15f4   :  { %3661 = vmatprep.subr.msk.bf16.mxu1 %vm4180_vm4, %v3659_v41 }
0x15f5   :  { %3414 = vmatmul.mubr.msk.f32.vlgmr.msra.gmra.mrb[22].mxu1 %vm382_vm5, %v1937_v42 }
0x15f6   :  { %3420 = vmatprep.mubr.msk.f32.mxu1 %vm294_vm3, %v2027_v44 }
0x15fa   :  { %3664 = vmatpush3.bf16.xpose.msk.msra.mxu1 %vm4180_vm4, %v3659_v41 }
0x1601   :  { %3421 = vmatmul.mubr.msk.f32.vlgmr.msra.gmra.mrb[24].mxu1 %vm294_vm3, %v2029_v45 }
0x16c3   :  { %v4504_v46 = vpop.f32.mrb[20].mxu1 }
0x16c4   :  { %v4506_v50 = vpop.f32.mrb[21].mxu1 }
0x16c8   :  { %v4508_v53 = vpop.f32.mrb[22].mxu1 }
0x16c9   :  { %v4510_v25 = vpop.f32.mrb[23].mxu1 }
0x16d4   :  { %v3422_v51 = vpop.f32.mrb[24].mxu1 }
0x16d5   :  { %v2118_v54 = vmul.f32 0.35355338, %v3422_v51  ;;  %v2108_v55 = vpop.f32.mrb[25].mxu1 }
0x16d6   :  { %v2117_v26 = vmul.f32 0.35355338, %v2108_v55 }
0x16d7   :  { %v2120_v56 = vadd.f32 %v3916_v27, %v2118_v54 }
0x16d8   :  { %v2119_v58 = vadd.f32 %v3917_v57, %v2117_v26 }
0x16d9   :  { %v2124_v59 = vsel %vm386_vm6, %v2120_v56, -inf }
0x16da   :  { %2125 = vmax.xlane.f32.xlu0 %v2124_v59  ;;  %v2121_v60 = vsel %vm382_vm5, %v2119_v58, -inf }
0x16db   :  { %2122 = vmax.xlane.f32.xlu1 %v2121_v60  ;;  %v3103_v60 = vld [vmem:[%s4706_s6 + $0x20] sm:$0xff] }
0x16ec   :  { %3810 = vrot.lane.b32.xlu1 %v4442_v23, %s3951_s20  ;;  %s3918_s20 = scalar_lea.vmem %s3012_s19, 32 }
0x16ed   :  { %p3919_p0 = scmp.ne.s32.totalorder %s3012_s19, %s3918_s20  ;;  %p3924_p2 = scmp.lt.s32.totalorder %s3918_s20, %s3918_s20 }
0x16ef   :  { %p3925_p3 = por %p3924_p2, %p3923_p1 }
0x16f0   :  { %2231 = vrot.lane.b32.xlu1 %v4436_v21, %s3952_s21 }
0x16f1   :  { %p3926_p4 = pnand %p3925_p3, %p3919_p0 }
0x16f4   :  { %2233 = vrot.lane.b32.xlu1 %v4434_v20, %s3952_s21 }
0x1767   :  { %v2126_v62 = vpop.xlane.xlu0 %2125 }
0x1768   :  { %v2128_v63 = vsub.f32 %v2120_v56, %v2126_v62  ;;  %v2123_v0 = vpop.xlane.xlu1 %2122  ;;  %v3105_v62 = vld [vmem:[%s4706_s6 + $0x30] sm:$0xff] }
0x1769   :  { %v2127_v52 = vsub.f32 %v2119_v58, %v2123_v0  ;;  %v3106_v0 = vld [vmem:[%s4706_s6 + $0x38] sm:$0xff] }
0x176a   :  { %v2131_v1 = vmul.f32 1.442695, %v2128_v63 }
0x176b   :  { %v2129_v33 = vmul.f32 1.442695, %v2127_v52  ;;  %v3687_v52 = vpack.c.bf16 %v3106_v0, %v3105_v62  ;;  %v3122_v62 = vld [vmem:[%s4709_s9 + $0x50] sm:$0xff]  ;;  %v3124_v0 = vld [vmem:[%s4709_s9 + $0x60] sm:$0xff] }
0x176c   :  { %3888 = vpow2.f32 %v2131_v1  ;;  %v3811_v2 = vpop.permute.xlu1 %3810 }
0x176d   :  { %v3813_v4 = vunpack.i.h.bf16 %v3811_v2  ;;  %v3812_v36 = vunpack.i.l.bf16 %v3811_v2  ;;  %3890 = vpow2.f32 %v2129_v33 }
0x176f   :  { %v3665_v5 = vpack.c.bf16 %v3813_v4, %v3812_v36 }
0x1770   :  { %v2232_v18 = vpop.permute.xlu1 %2231 }
0x1771   :  { %3667 = vmatprep.subr.msk.bf16.mxu0 %vm4208_vm9, %v3665_v5 }
0x1772   :  { %3670 = vmatpush3.bf16.msk.msra.mxu0 %vm4208_vm9, %v3665_v5 }
0x1774   :  { %v2234_v19 = vpop.permute.xlu1 %2233 }
0x1776   :  { %v3889_v21 = vpop.eup %3888 }
0x1777   :  { %v2136_v20 = vsel %vm386_vm6, %v3889_v21, 0.0  ;;  %v3891_v6 = vpop.eup %3890 }
0x1778   :  { %2137 = vadd.xlane.f32.xlu0 %v2136_v20  ;;  %v2133_v9 = vsel %vm382_vm5, %v3891_v6, 0.0 }
0x177c   :  { %2134 = vadd.xlane.f32.xlu0 %v2133_v9 }
0x1792   :  { %3815 = vrot.lane.b32.xlu0 %v4442_v23, %s3953_s22 }
0x1805   :  { %v2138_v10 = vpop.xlane.xlu0 %2137 }
0x1806   :  { %3892 = vrcp.f32 %v2138_v10 }
0x1809   :  { %v2135_v24 = vpop.xlane.xlu0 %2134 }
0x180a   :  { %3894 = vrcp.f32 %v2135_v24 }
0x180d   :  { %v3816_v22 = vpop.permute.xlu0 %3815 }
0x180e   :  { %v3818_v11 = vunpack.i.h.bf16 %v3816_v22  ;;  %v3817_v12 = vunpack.i.l.bf16 %v3816_v22 }
0x1810   :  { %v3671_v13 = vpack.c.bf16 %v3818_v11, %v3817_v12  ;;  %v3893_v14 = vpop.eup %3892 }
0x1811   :  { %v2142_v17 = vmul.f32 %v3893_v14, %v3889_v21 }
0x1812   :  { %3673 = vmatprep.subr.msk.bf16.mxu0 %vm4180_vm4, %v3671_v13 }
0x1814   :  { %v3895_v15 = vpop.eup %3894 }
0x1815   :  { %v2140_v16 = vmul.f32 %v3895_v15, %v3891_v6 }
0x1817   :  { %3427 = vmatprep.mubr.msk.f32.mxu0 %vm382_vm5, %v2140_v16 }
0x1818   :  { %3428 = vmatmul.mubr.msk.f32.vlgmr.msra.gmra.mrb[14].mxu0 %vm382_vm5, %v2142_v17 }
0x1819   :  { %3676 = vmatpush3.bf16.xpose.msk.msra.mxu0 %vm4180_vm4, %v3671_v13  ;;  %3434 = vmatprep.mubr.msk.f32.mxu0 %vm294_vm3, %v2232_v18 }
0x1820   :  { %3435 = vmatmul.mubr.msk.f32.vlgmr.msra.gmra.mrb[16].mxu0 %vm294_vm3, %v2234_v19 }
0x18eb   :  { %v3429_v8 = vpop.f32.mrb[14].mxu0 }
0x18ec   :  { %v2222_v7 = vpop.f32.mrb[15].mxu0 }
0x18f3   :  { %v3436_v28 = vpop.f32.mrb[16].mxu0 }
0x18f4   :  { %v2323_v30 = vmul.f32 0.35355338, %v3436_v28  ;;  %v2313_v31 = vpop.f32.mrb[17].mxu0 }
0x18f5   :  { %v2322_v32 = vmul.f32 0.35355338, %v2313_v31 }
0x18f6   :  { %v2325_v34 = vadd.f32 %v3916_v27, %v2323_v30 }
0x18f7   :  { %v2324_v35 = vadd.f32 %v3917_v57, %v2322_v32 }
0x18f8   :  { %v2329_v48 = vsel %vm386_vm6, %v2325_v34, -inf }
0x18f9   :  { %2330 = vmax.xlane.f32.xlu0 %v2329_v48  ;;  %v2326_v43 = vsel %vm382_vm5, %v2324_v35, -inf  ;;  %v3113_v48 = vld [vmem:[%s4707_s7 + $0x28] sm:$0xff] }
0x18fa   :  { %2327 = vmax.xlane.f32.xlu1 %v2326_v43 }
0x190b   :  { %3820 = vrot.lane.b32.xlu1 %v4442_v23, %s3954_s23 }
0x190f   :  { %2440 = vrot.lane.b32.xlu1 %v4508_v53, %s3955_s24 }
0x1913   :  { %2446 = vrot.lane.b32.xlu1 %v2222_v7, %s4720_s2 }
0x1917   :  { %2448 = vrot.lane.b32.xlu1 %v3429_v8, %s4720_s2 }
0x1986   :  { %v2331_v29 = vpop.xlane.xlu0 %2330 }
0x1987   :  { %v2333_v37 = vsub.f32 %v2325_v34, %v2331_v29  ;;  %v2328_v38 = vpop.xlane.xlu1 %2327  ;;  %v3114_v29 = vld [vmem:[%s4707_s7 + $0x30] sm:$0xff] }
0x1988   :  { %v2332_v39 = vsub.f32 %v2324_v35, %v2328_v38  ;;  %v3112_v35 = vld [vmem:[%s4707_s7 + $0x20] sm:$0xff] }
0x1989   :  { %v2336_v40 = vmul.f32 1.442695, %v2333_v37  ;;  %v3691_v43 = vpack.c.bf16 %v3113_v48, %v3112_v35  ;;  %v3115_v37 = vld [vmem:[%s4707_s7 + $0x38] sm:$0xff]  ;;  %v3130_v48 = vld [vmem:[%s4710_s10 + $0xb] ss:$0 sm:$0xff] }
0x198a   :  { %v2334_v41 = vmul.f32 1.442695, %v2332_v39  ;;  %v3695_v38 = vpack.c.bf16 %v3115_v37, %v3114_v29 }
0x198b   :  { %v3821_v42 = vpop.permute.xlu1 %3820  ;;  %3692 = vmatprep.subr.bf16.mxu0 %v3691_v43 }
0x198c   :  { %3896 = vpow2.f32 %v2334_v41  ;;  %v3823_v44 = vunpack.i.h.bf16 %v3821_v42  ;;  %v3822_v45 = vunpack.i.l.bf16 %v3821_v42  ;;  %3694 = vmatpush3.bf16.msra.mxu0 %v3691_v43 }
0x198d   :  { %3898 = vpow2.f32 %v2336_v40  ;;  %3696 = vmatprep.subr.bf16.mxu0 %v3695_v38 }
0x198e   :  { %v3677_v51 = vpack.c.bf16 %v3823_v44, %v3822_v45 }
0x198f   :  { %v2441_v2 = vpop.permute.xlu1 %2440 }
0x1990   :  { %3679 = vmatprep.subr.msk.bf16.mxu1 %vm4208_vm9, %v3677_v51  ;;  %v2461_v6 = vsel %vm294_vm3, %v4504_v46, %v2441_v2  ;;  %3698 = vmatpush3.bf16.msra.mxu0 %v3695_v38  ;;  %v3126_v2 = vld [vmem:[%s4709_s9 + $0x70] sm:$0xff] }
0x1991   :  { %3682 = vmatpush3.bf16.msk.msra.mxu1 %vm4208_vm9, %v3677_v51  ;;  %3715 = vmatprep.subr.bf16.mxu0 %v3942_v3 }
0x1993   :  { %v2447_v4 = vpop.permute.xlu1 %2446 }
0x1996   :  { %v3897_v23 = vpop.eup %3896 }
0x1997   :  { %v2338_v53 = vsel %vm382_vm5, %v3897_v23, 0.0  ;;  %v3899_v54 = vpop.eup %3898  ;;  %v2449_v5 = vpop.permute.xlu1 %2448 }
0x1998   :  { %2339 = vadd.xlane.f32.xlu0 %v2338_v53  ;;  %v2341_v55 = vsel %vm386_vm6, %v3899_v54, 0.0  ;;  %v2463_v24 = vsel %vm1136_vm10, %v2461_v6, %v2449_v5  ;;  %v3117_v5 = vld [vmem:[%s4708_s8 + $0x1] ss:$0 sm:$0xff] }
0x199c   :  { %2342 = vadd.xlane.f32.xlu0 %v2341_v55 }
0x19b2   :  { %2438 = vrot.lane.b32.xlu0 %v4510_v25, %s3955_s24  ;;  %v3104_v25 = vld [vmem:[%s4706_s6 + $0x28] sm:$0xff]  ;;  %s4721_s24 = smov 24  }
0x19b3   :  { %v3683_v63 = vpack.c.bf16 %v3104_v25, %v3103_v60  ;;  %v3121_v60 = vld [vmem:[%s4709_s9 + $0x48] sm:$0xff] }
0x19b5   :  { %3684 = vmatprep.subr.bf16.mxu1 %v3683_v63 }
0x1a25   :  { %v2340_v26 = vpop.xlane.xlu0 %2339 }
0x1a26   :  { %3900 = vrcp.f32 %v2340_v26 }
0x1a29   :  { %v2343_v27 = vpop.xlane.xlu0 %2342 }
0x1a2a   :  { %3902 = vrcp.f32 %v2343_v27 }
0x1a2d   :  { %v2439_v36 = vpop.permute.xlu0 %2438 }
0x1a2e   :  { %v2460_v21 = vsel %vm294_vm3, %v4506_v50, %v2439_v36  ;;  %v3109_v50 = vld [vmem:[%s4710_s10 + $0x8] ss:$0 sm:$0xff] }
0x1a2f   :  { %v2462_v9 = vsel %vm1136_vm10, %v2460_v21, %v2447_v4  ;;  %v3127_v4 = vld [vmem:[%s4709_s9 + $0x78] sm:$0xff] }
0x1a30   :  { %v3901_v56 = vpop.eup %3900  ;;  %v3711_v36 = vpack.c.bf16 %v3127_v4, %v3126_v2 }
0x1a31   :  { %v2345_v57 = vmul.f32 %v3901_v56, %v3897_v23  ;;  %v3110_v23 = vld [vmem:[%s4710_s10 + $0x9] ss:$0 sm:$0xff] }
0x1a33   :  { %3441 = vmatprep.mubr.msk.f32.mxu1 %vm382_vm5, %v2345_v57 }
0x1a34   :  { %v3903_v58 = vpop.eup %3902 }
0x1a35   :  { %v2347_v59 = vmul.f32 %v3903_v58, %v3899_v54  ;;  %v3111_v54 = vld [vmem:[%s4710_s10 + $0xa] ss:$0 sm:$0xff] }
0x1a37   :  { %3442 = vmatmul.mubr.msk.f32.vlgmr.msra.gmra.mrb[26].mxu1 %vm382_vm5, %v2347_v59  ;;  %v3120_v59 = vld [vmem:[%s4709_s9 + $0x40] sm:$0xff] }
0x1a38   :  { %3686 = vmatpush3.bf16.msra.mxu1 %v3683_v63  ;;  %v3699_v25 = vpack.c.bf16 %v3121_v60, %v3120_v59  ;;  %v3123_v63 = vld [vmem:[%s4709_s9 + $0x58] sm:$0xff] }
0x1a39   :  { %3688 = vmatprep.subr.bf16.mxu1 %v3687_v52 }
0x1a3c   :  { %3690 = vmatpush3.bf16.msra.mxu1 %v3687_v52  ;;  %v3703_v52 = vpack.c.bf16 %v3123_v63, %v3122_v62  ;;  %v3133_v63 = vld [vmem:[%s4710_s10 + $0xc] ss:$0 sm:$0xff] }
0x1a3d   :  { %3700 = vmatprep.subr.bf16.mxu1 %v3699_v25 }
0x1b0a   :  { %v3443_v1 = vpop.f32.mrb[26].mxu1 }
0x1b0b   :  { %2456 = vrot.lane.b32.xlu1 %v3443_v1, %s4721_s24  ;;  %v2427_v33 = vpop.f32.mrb[27].mxu1  ;;  %v3125_v1 = vld [vmem:[%s4709_s9 + $0x68] sm:$0xff] }
0x1b0c   :  { %2454 = vrot.lane.b32.xlu0 %v2427_v33, %s4721_s24  ;;  %v3707_v33 = vpack.c.bf16 %v3125_v1, %v3124_v0  ;;  %v3134_v0 = vld [vmem:[%s4710_s10 + $0xd] ss:$0 sm:$0xff] }
0x1b7d   :  { %v2457_v20 = vpop.permute.xlu1 %2456 }
0x1b7e   :  { %v2455_v10 = vpop.permute.xlu0 %2454  ;;  %v2465_v11 = vsel %vm1139_vm11, %v2463_v24, %v2457_v20 }
0x1b7f   :  { %v2464_v22 = vsel %vm1139_vm11, %v2462_v9, %v2455_v10 }
0x1b80   :  { %3452 = vmatprep.mubr.msk.f32.mxu1 %vm155_vm1, %v2464_v22 }
0x1b81   :  { %3453 = vmatmul.mubr.msk.f32.vlgmr.msra.gmra.mrb[28].mxu1 %vm155_vm1, %v2465_v11 }
0x1b82   :  { %3702 = vmatpush3.bf16.msra.mxu1 %v3699_v25 }
0x1b83   :  { %3704 = vmatprep.subr.bf16.mxu1 %v3703_v52 }
0x1b86   :  { %3706 = vmatpush3.bf16.msra.mxu1 %v3703_v52 }
0x1b87   :  { %3708 = vmatprep.subr.bf16.mxu1 %v3707_v33 }
0x1b8a   :  { %3710 = vmatpush3.bf16.msra.mxu1 %v3707_v33  ;;  %v3139_v33 = vld [vmem:[%s4710_s10 + $0xe] ss:$0 sm:$0xff] }
0x1b8b   :  { %3712 = vmatprep.subr.bf16.mxu1 %v3711_v36 }
0x1b8e   :  { %3714 = vmatpush3.bf16.msra.mxu1 %v3711_v36 }
0x1c54   :  { %v3454_v12 = vpop.f32.mrb[28].mxu1 }
0x1c55   :  { %v2553_v46 = vadd.f32 %v3454_v12, %v4399_v47  ;;  %v2543_v13 = vpop.f32.mrb[29].mxu1 }
0x1c56   :  { %v2552_v14 = vadd.f32 %v2543_v13, %v4401_v49 }
0x1c57   :  { %v4589_v15 = vadd.f32 %v3109_v50, %v2553_v46 }
0x1c58   :  { %v4591_v16 = vadd.f32 %v3109_v50, %v2552_v14 }
0x1c59   :  { %v2566_v17 = vsel %vm159_vm2, %v4589_v15, 0.0 }
0x1c5a   :  { %2567 = vadd.xlane.f32.xlu1 %v2566_v17  ;;  %v2563_v18 = vsel %vm155_vm1, %v4591_v16, 0.0 }
0x1c5b   :  { %2564 = vadd.xlane.f32.xlu0 %v2563_v18 }
0x1ce7   :  { %v2568_v19 = vpop.xlane.xlu1 %2567 }
0x1ce8   :  { %v2570_v8 = vmul.f32 0.03125, %v2568_v19  ;;  %v2565_v7 = vpop.xlane.xlu0 %2564 }
0x1ce9   :  { %v2569_v28 = vmul.f32 0.03125, %v2565_v7 }
0x1cea   :  { %v2572_v47 = vsub.f32 %v4589_v15, %v2570_v8 }
0x1ceb   :  { %v2571_v49 = vsub.f32 %v4591_v16, %v2569_v28 }
0x1cec   :  { %v2574_v32 = vmul.f32 %v2572_v47, %v2572_v47 }
0x1ced   :  { %v2573_v30 = vmul.f32 %v2571_v49, %v2571_v49 }
0x1cee   :  { %v2578_v34 = vsel %vm159_vm2, %v2574_v32, 0.0  ;;  %v2812_v32 = vlaneseq }
0x1cef   :  { %v2575_v31 = vsel %vm155_vm1, %v2573_v30, 0.0 }
0x1cf0   :  { %2576 = vadd.xlane.f32.xlu0 %v2575_v31  ;;  %v3959_v31 = vmov 0.0   ;;  %v2813_v37 = vand.u32 127, %v2812_v32 }
0x1cf4   :  { %2579 = vadd.xlane.f32.xlu0 %v2578_v34  ;;  %v2815_v34 = vshrl.u32 %v2812_v32, 7 }
0x1cf6   :  { %v2816_v38 = vmul.u32 5, %v2815_v34 }
0x1cf8   :  { %vm2817_vm13 = vcmp.eq.s32.totalorder %v2813_v37, %v2816_v38 }
0x1d7d   :  { %v2577_v39 = vpop.xlane.xlu0 %2576 }
0x1d7e   :  { %v2581_v40 = vmul.f32 0.03125, %v2577_v39 }
0x1d80   :  { %v2583_v41 = vadd.f32 1e-12, %v2581_v40 }
0x1d81   :  { %v2580_v42 = vpop.xlane.xlu0 %2579 }
0x1d82   :  { %3904 = vrsqrt.f32 %v2583_v41  ;;  %v2582_v44 = vmul.f32 0.03125, %v2580_v42 }
0x1d84   :  { %v2584_v45 = vadd.f32 1e-12, %v2582_v44  ;;  %v2818_v44 = vsel %vm2817_vm13, 1.0, %v3959_v31 }
0x1d86   :  { %3906 = vrsqrt.f32 %v2584_v45 }
0x1d8c   :  { %v3905_v51 = vpop.eup %3904 }
0x1d8d   :  { %v2587_v53 = vmul.f32 %v3905_v51, %v2571_v49 }
0x1d8f   :  { %v2593_v55 = vmul.f32 %v3110_v23, %v2587_v53 }
0x1d90   :  { %v3907_v26 = vpop.eup %3906 }
0x1d91   :  { %v2588_v27 = vmul.f32 %v3907_v26, %v2572_v47  ;;  %v2599_v56 = vadd.f32 %v3111_v54, %v2593_v55  ;;  %v3136_v26 = vld [vmem:[%s4706_s6 + $0x48] sm:$0xff] }
0x1d93   :  { %v2594_v57 = vmul.f32 %v3110_v23, %v2588_v27  ;;  %3463 = vmatprep.mubr.msk.f32.mxu0 %vm155_vm1, %v2599_v56  ;;  %v3720_v27 = vpack.c.bf16 %v3136_v26, %v3135_v61  ;;  %v3137_v56 = vld [vmem:[%s4706_s6 + $0x50] sm:$0xff] }
0x1d95   :  { %v2600_v58 = vadd.f32 %v3111_v54, %v2594_v57  ;;  %v3138_v57 = vld [vmem:[%s4706_s6 + $0x58] sm:$0xff] }
0x1d97   :  { %3464 = vmatmul.mubr.msk.f32.vlgmr.msra.gmra.mrb[18].mxu0 %vm155_vm1, %v2600_v58  ;;  %v3723_v58 = vpack.c.bf16 %v3138_v57, %v3137_v56 }
0x1d98   :  { %3489 = vmatprep.mubr.msk.f32.mxu0 %vm3958_vm12, %v3959_v31 }
0x1e6a   :  { %v3465_v21 = vpop.f32.mrb[18].mxu0 }
0x1e6b   :  { %v2692_v20 = vadd.f32 %v3465_v21, %v3117_v5  ;;  %v2686_v6 = vpop.f32.mrb[19].mxu0 }
0x1e6c   :  { %v2687_v9 = vadd.f32 %v3117_v5, %v2686_v6 }
0x1e6d   :  { %v2698_v10 = vmul.f32 0.044715, %v2692_v20  ;;  %v2696_v47 = vmul.f32 0.5, %v2692_v20 }
0x1e6e   :  { %v2697_v24 = vmul.f32 0.044715, %v2687_v9  ;;  %v2695_v7 = vmul.f32 0.5, %v2687_v9 }
0x1e6f   :  { %v2700_v22 = vmul.f32 %v2698_v10, %v2692_v20 }
0x1e70   :  { %v2699_v11 = vmul.f32 %v2697_v24, %v2687_v9 }
0x1e71   :  { %v2702_v12 = vmul.f32 %v2700_v22, %v2692_v20 }
0x1e72   :  { %v2701_v50 = vmul.f32 %v2699_v11, %v2687_v9 }
0x1e73   :  { %v2704_v46 = vadd.f32 %v2702_v12, %v2692_v20 }
0x1e74   :  { %v2703_v13 = vadd.f32 %v2701_v50, %v2687_v9 }
0x1e75   :  { %v2706_v14 = vmul.f32 0.7978846, %v2704_v46 }
0x1e76   :  { %v2705_v17 = vmul.f32 0.7978846, %v2703_v13 }
0x1e77   :  { %3908 = vtanh.f32 %v2706_v14 }
0x1e78   :  { %3910 = vtanh.f32 %v2705_v17 }
0x1e81   :  { %v3909_v18 = vpop.eup %3908 }
0x1e82   :  { %v3911_v19 = vpop.eup %3910  ;;  %v2710_v8 = vadd.f32 1.0, %v3909_v18 }
0x1e83   :  { %v2709_v28 = vadd.f32 1.0, %v3911_v19 }
0x1e84   :  { %v2712_v30 = vmul.f32 %v2710_v8, %v2696_v47 }
0x1e85   :  { %v2711_v49 = vmul.f32 %v2709_v28, %v2695_v7 }
0x1e87   :  { %3482 = vmatprep.mubr.msk.f32.mxu1 %vm69_vm0, %v2711_v49 }
0x1e88   :  { %3483 = vmatmul.mubr.msk.f32.vlgmr.msra.gmra.mrb[30].mxu1 %vm69_vm0, %v2712_v30 }
0x1f5b   :  { %v3484_v35 = vpop.f32.mrb[30].mxu1 }
0x1f5c   :  { %v2804_v43 = vadd.f32 %v3484_v35, %v4589_v15  ;;  %v2794_v29 = vpop.f32.mrb[31].mxu1 }
0x1f5d   :  { %v2803_v39 = vadd.f32 %v2794_v29, %v4591_v16 }
0x1f5e   :  { %v2811_v40 = vadd.f32 %v3130_v48, %v2804_v43 }
0x1f5f   :  { %v2810_v41 = vadd.f32 %v3130_v48, %v2803_v39 }
0x1f61   :  { %v3716_v42 = vpack.c.bf16 %v2811_v40, %v2810_v41 }
0x1f63   :  { %3718 = vmatpush3.bf16.msk.msra.mxu0 %vm4208_vm9, %v3716_v42 }
0x1f64   :  { %3719 = vmatprep.subr.bf16.mxu0 %v3942_v3 }
0x1f66   :  { %3490 = vmatmul.mubr.msk.f32.vlgmr.msra.gmra.mrb[20].mxu0 %vm382_vm5, %v2818_v44 }
0x1f67   :  { %3500 = vmatprep.mubr.msk.f32.mxu0 %vm3958_vm12, %v3959_v31  ;;  %3721 = vmatpush3.bf16.msra.mxu0 %v3720_v27 }
0x1f68   :  { %3722 = vmatprep.subr.bf16.mxu0 %v3942_v3 }
0x1f6b   :  { %3724 = vmatpush3.bf16.msra.mxu0 %v3723_v58 }
0x2039   :  { %v2891_v15 = vpop.f32.mrb[20].mxu0 }
0x203a   :  { %v3491_v45 = vpop.f32.mrb[21].mxu0  ;;  %v2897_v51 = vsel %vm159_vm2, %v2891_v15, 0.0 }
0x203b   :  { %2898 = vadd.xlane.f32.xlu0 %v2897_v51 }
0x20c8   :  { %v2899_v16 = vpop.xlane.xlu0 %2898 }
0x20c9   :  { %v2900_v23 = vmul.f32 0.03125, %v2899_v16 }
0x20cb   :  { %v2901_v53 = vsub.f32 %v2891_v15, %v2900_v23 }
0x20cd   :  { %v2902_v54 = vmul.f32 %v2901_v53, %v2901_v53 }
0x20cf   :  { %v2903_v55 = vsel %vm159_vm2, %v2902_v54, 0.0 }
0x20d0   :  { %2904 = vadd.xlane.f32.xlu1 %v2903_v55 }
0x215d   :  { %v2905_v59 = vpop.xlane.xlu1 %2904 }
0x215e   :  { %v2906_v60 = vmul.f32 0.03125, %v2905_v59 }
0x2160   :  { %v2907_v25 = vadd.f32 1e-12, %v2906_v60 }
0x2162   :  { %3912 = vrsqrt.f32 %v2907_v25 }
0x216c   :  { %v3913_v62 = vpop.eup %3912 }
0x216d   :  { %v2909_v3 = vmul.f32 %v3913_v62, %v2901_v53 }
0x216f   :  { %v2914_v52 = vmul.f32 %v3133_v63, %v2909_v3 }
0x2171   :  { %v2919_v1 = vadd.f32 %v3134_v0, %v2914_v52 }
0x2173   :  { %3501 = vmatmul.mubr.msk.f32.vlgmr.msra.gmra.mrb[22].mxu0 %vm155_vm1, %v2919_v1 }
0x2246   :  { %v2999_v2 = vpop.f32.mrb[22].mxu0 }
0x2247   :  { %v3000_v4 = vadd.f32 %v3139_v33, %v2999_v2  ;;  %v3502_v36 = vpop.f32.mrb[23].mxu0 }
0x2249   :  { %3914 = vtanh.f32 %v3000_v4 }
0x2253   :  { %v3915_v5 = vpop.eup %3914 }
0x2254   :  { %3004 = vst.msk [vmem:[#allocation2] sm:$0x3] %vm159_vm2, %v3915_v5 }
0x2255   :  { %3929 = shalt.err (!%p3926_p4)
}
0x2256   :  { %s3930_s10 = scalar_lea.hbm %s4711_s11, 32 }
0x2257   :  { %p3931_p5 = scmp.ne.s32.totalorder %s4711_s11, %s3930_s10  ;;  %p3934_p6 = scmp.lt.u32.totalorder %s3930_s10, %s4711_s11 }
0x2259   :  { %p3936_p7 = pnand %p3934_p6, %p3931_p5 }
0x225b   :  { %3939 = shalt.err (!%p3936_p7)
}
0x225c   :  { %3014 = dma.vmem_to_hbm [thread:$0]  %s3012_s19, 32, %s4711_s11, [#allocation3]  }
0x225d   :  { %3940 = dma.done.wait [#allocation3], 32  }
0x225e   :  { %3941 = vsyncadd [#allocation3], 4294967264 }
0x225f   :  { %3018 = vsyncpa [#allocation3], 1 }

</bundles_post_ra>
